<compile_context>
chip_gen: v6e
topology: v6e:2x2x1
jax: 0.10.0
libtpu: 0.0.40
codegen_flags: <defaults>
</compile_context>

<pallas_src>
import numpy as np
import jax
import jax.numpy as jnp
from jax import lax
from jax.experimental import pallas as pl
from jax.experimental.pallas import tpu as pltpu


def _make_attn_kernel(n_heads: int, proj_size: int, mxu_dtype):
    H, D = n_heads, proj_size

    def kernel(xq_ref, xs_ref, wq_ref, wk_ref, wv_ref, bq_ref, bk_ref, bv_ref,
               weights_ref, values_ref, k_sc, v_sc, vacc):
        qi = pl.program_id(1)

        # --- K/V projection: computed once per batch element (qi == 0) and
        #     kept resident in VMEM scratch across all query tiles. ---------
        @pl.when(qi == 0)
        def _():
            xs = xs_ref[0].astype(mxu_dtype)                          # (S, E)
            for h in range(H):                                        # static, small H
                kh = jnp.dot(xs, wk_ref[h].astype(mxu_dtype),
                             preferred_element_type=jnp.float32) + bk_ref[h]
                vh = jnp.dot(xs, wv_ref[h].astype(mxu_dtype),
                             preferred_element_type=jnp.float32) + bv_ref[h]
                k_sc[h] = kh.astype(k_sc.dtype)
                v_sc[h] = vh.astype(v_sc.dtype)

        xq = xq_ref[0].astype(mxu_dtype)                              # (TQ, E)

        for h in range(H):                                            # static, small H
            # Q projection for this head / query tile (1/sqrt(D) already folded
            # into wq/bq on the host).
            qh = (jnp.dot(xq, wq_ref[h].astype(mxu_dtype),
                          preferred_element_type=jnp.float32)
                  + bq_ref[h])                                        # (TQ, D)

            # scores = qh @ kh^T contracting the last dims (same contraction
            # pattern as the reference flash kernel's einsum('bqd,bkd->bqk')).
            scores = lax.dot_general(qh.astype(mxu_dtype), k_sc[h],
                                     (((1,), (1,)), ((), ())),
                                     preferred_element_type=jnp.float32)  # (TQ, S)

            # numerically stable softmax over the key axis
            m = jnp.max(scores, axis=-1, keepdims=True)
            e = jnp.exp(scores - m)
            denom = jnp.sum(e, axis=-1, keepdims=True)
            w = e * pl.reciprocal(denom, approx=False)                # EUP slot

            # stream this head's weights straight out (lane-dense in S)
            weights_ref[0, h] = w

            # per-head output into the (TQ, E) concat accumulator
            vacc[:, h * D:(h + 1) * D] = jnp.dot(
                w.astype(mxu_dtype), v_sc[h],
                preferred_element_type=jnp.float32)

        # single lane-dense (TQ, E) store of the concatenated head outputs
        values_ref[0] = vacc[...]

    return kernel


def self_attention_block(x, params, n_heads, *, mxu_dtype=jnp.float32):
    """x: (B, S, E) float32. params: dict of q/k/v weights (E,E) and biases (E,)."""
    B, S, E = x.shape
    assert E % n_heads == 0
    H = n_heads
    D = E // H
    inv_scaling = 1.0 / float(np.sqrt(D))

    # --- host-side weight prep ---------------------------------------------
    # PyTorch Linear: y = x @ W.T + b. Pre-transpose and split per head so each
    # head's projection is its own (E, D) matmul; fold 1/sqrt(D) into Q.
    def per_head(w):                       # (E_out, E_in) -> (H, E_in, D)
        return jnp.transpose(w.T.reshape(E, H, D), (1, 0, 2))

    wq_h = per_head(params["wq"]) * inv_scaling
    wk_h = per_head(params["wk"])
    wv_h = per_head(params["wv"])
    bq_h = (params["bq"] * inv_scaling).reshape(H, 1, D)
    bk_h = params["bk"].reshape(H, 1, D)
    bv_h = params["bv"].reshape(H, 1, D)

    # query-tile size: full sequence when small, 128-row tiles otherwise
    tq = 128 if (S >= 128 and S % 128 == 0) else S
    nq = S // tq

    kernel = _make_attn_kernel(H, D, mxu_dtype)

    # --- VMEM budget (generation-aware, includes scratch + temporaries) -----
    try:
        vmem_cap = int(pltpu.get_tpu_info().vmem_capacity_bytes)
    except Exception:                      # fall back to v7x physical ceiling
        vmem_cap = 64 << 20
    f32 = 4
    cbytes = jnp.dtype(mxu_dtype).itemsize
    blocks = 2 * (tq * E + S * E + H * tq * S + tq * E) * f32     # double-buffered I/O blocks
    consts = (3 * H * E * D + 3 * H * D) * f32                    # resident per-head weights/biases
    scratch = (2 * H * S * D) * cbytes + tq * E * f32             # K/V scratch + value accumulator
    temps = (6 * tq * S + 6 * tq * D) * f32                       # scores / exp / softmax temporaries
    vmem_limit = max(blocks + consts + scratch + temps + (8 << 20), 16 << 20)
    vmem_limit = int(min(vmem_limit, vmem_cap - (8 << 20)))

    weights, values = pl.pallas_call(
        kernel,
        out_shape=(
            jax.ShapeDtypeStruct((B, H, S, S), jnp.float32),
            jax.ShapeDtypeStruct((B, S, E), jnp.float32),
        ),
        grid_spec=pltpu.PrefetchScalarGridSpec(
            num_scalar_prefetch=0,
            grid=(B, nq),
            in_specs=[
                pl.BlockSpec((1, tq, E), lambda b, qi: (b, qi, 0)),    # x (query tile)
                pl.BlockSpec((1, S, E), lambda b, qi: (b, 0, 0)),      # x (full seq, for K/V)
                pl.BlockSpec((H, E, D), lambda b, qi: (0, 0, 0)),      # Wq per head (pre-scaled)
                pl.BlockSpec((H, E, D), lambda b, qi: (0, 0, 0)),      # Wk per head
                pl.BlockSpec((H, E, D), lambda b, qi: (0, 0, 0)),      # Wv per head
                pl.BlockSpec((H, 1, D), lambda b, qi: (0, 0, 0)),      # bq (pre-scaled)
                pl.BlockSpec((H, 1, D), lambda b, qi: (0, 0, 0)),      # bk
                pl.BlockSpec((H, 1, D), lambda b, qi: (0, 0, 0)),      # bv
            ],
            out_specs=[
                pl.BlockSpec((1, H, tq, S), lambda b, qi: (b, 0, qi, 0)),
                pl.BlockSpec((1, tq, E), lambda b, qi: (b, qi, 0)),
            ],
            scratch_shapes=[
                pltpu.VMEM((H, S, D), mxu_dtype),     # K, resident across query tiles
                pltpu.VMEM((H, S, D), mxu_dtype),     # V, resident across query tiles
                pltpu.VMEM((tq, E), jnp.float32),     # concatenated head-output accumulator
            ],
        ),
        compiler_params=pltpu.CompilerParams(
            dimension_semantics=("parallel", "arbitrary"),
            vmem_limit_bytes=vmem_limit),
    )(x, x, wq_h, wk_h, wv_h, bq_h, bk_h, bv_h)

    return weights, values


def reference_self_attention(x, params, n_heads):
    """Pure-JAX reference mirroring the PyTorch module."""
    B, S, E = x.shape
    D = E // n_heads
    scaling = np.sqrt(D)

    def lin(x, w, b):
        return jnp.einsum("bse,fe->bsf", x, w) + b

    q = lin(x, params["wq"], params["bq"]).reshape(B, S, n_heads, D).transpose(0, 2, 1, 3)
    k = lin(x, params["wk"], params["bk"]).reshape(B, S, n_heads, D).transpose(0, 2, 1, 3)
    v = lin(x, params["wv"], params["bv"]).reshape(B, S, n_heads, D).transpose(0, 2, 1, 3)

    scores = jnp.einsum("bhqd,bhkd->bhqk", q, k) / scaling
    weights = jax.nn.softmax(scores, axis=-1)
    values = jnp.einsum("bhqk,bhkd->bhqd", weights, v)
    values = values.transpose(0, 2, 1, 3).reshape(B, S, E)
    return weights, values


if __name__ == "__main__":
    B, S, E, H = 2, 8, 32, 4   # batch, seq, emb_size, n_heads

    key = jax.random.PRNGKey(0)
    kx, kwq, kbq, kwk, kbk, kwv, kbv = jax.random.split(key, 7)

    # deterministic parameter init (nn.Linear-style uniform bound)
    bound = 1.0 / np.sqrt(E)
    params = {
        "wq": jax.random.uniform(kwq, (E, E), jnp.float32, -bound, bound),
        "bq": jax.random.uniform(kbq, (E,), jnp.float32, -bound, bound),
        "wk": jax.random.uniform(kwk, (E, E), jnp.float32, -bound, bound),
        "bk": jax.random.uniform(kbk, (E,), jnp.float32, -bound, bound),
        "wv": jax.random.uniform(kwv, (E, E), jnp.float32, -bound, bound),
        "bv": jax.random.uniform(kbv, (E,), jnp.float32, -bound, bound),
    }
    x = jax.random.normal(kx, (B, S, E), jnp.float32)

    # f32 MXU operands here to hold the tight tolerance; pass
    # mxu_dtype=jnp.bfloat16 for production-speed MXU (relax tolerance).
    weights, values = self_attention_block(x, params, H)
    weights, values = jax.block_until_ready((weights, values))

    ref_w, ref_v = reference_self_attention(x, params, H)
    np.testing.assert_allclose(np.asarray(weights), np.asarray(ref_w),
                               rtol=1e-5, atol=1e-5)
    np.testing.assert_allclose(np.asarray(values), np.asarray(ref_v),
                               rtol=1e-5, atol=1e-5)

    print("KERNEL_OK")
</pallas_src>

<mosaic_0001>
module attributes {stable_mosaic.version = 11 : i64} {
  func.func @kernel(%arg0: i32, %arg1: i32, %arg2: memref<1x8x32xf32, #tpu.memory_space<vmem>>, %arg3: memref<1x8x32xf32, #tpu.memory_space<vmem>>, %arg4: memref<4x32x8xf32, #tpu.memory_space<vmem>>, %arg5: memref<4x32x8xf32, #tpu.memory_space<vmem>>, %arg6: memref<4x32x8xf32, #tpu.memory_space<vmem>>, %arg7: memref<4x1x8xf32, #tpu.memory_space<vmem>>, %arg8: memref<4x1x8xf32, #tpu.memory_space<vmem>>, %arg9: memref<4x1x8xf32, #tpu.memory_space<vmem>>, %arg10: memref<1x4x8x8xf32, #tpu.memory_space<vmem>>, %arg11: memref<1x8x32xf32, #tpu.memory_space<vmem>>, %arg12: memref<4x8x8xf32, #tpu.memory_space<vmem>>, %arg13: memref<4x8x8xf32, #tpu.memory_space<vmem>>, %arg14: memref<8x32xf32, #tpu.memory_space<vmem>>) attributes {dimension_semantics = [#tpu.dimension_semantics<parallel>, #tpu.dimension_semantics<arbitrary>], iteration_bounds = array<i64: 2, 1>, scalar_prefetch = 0 : i64, scratch_operands = 3 : i64, tpu.core_type = #tpu.core_type<tc>, window_params = [{transform_indices = @transform_0, window_bounds = array<i64: 1, 8, 32>}, {transform_indices = @transform_1, window_bounds = array<i64: 1, 8, 32>}, {pipeline_mode = #tpu.pipeline_mode<synchronous>, transform_indices = @transform_2, window_bounds = array<i64: 4, 32, 8>}, {pipeline_mode = #tpu.pipeline_mode<synchronous>, transform_indices = @transform_3, window_bounds = array<i64: 4, 32, 8>}, {pipeline_mode = #tpu.pipeline_mode<synchronous>, transform_indices = @transform_4, window_bounds = array<i64: 4, 32, 8>}, {pipeline_mode = #tpu.pipeline_mode<synchronous>, transform_indices = @transform_5, window_bounds = array<i64: 4, 1, 8>}, {pipeline_mode = #tpu.pipeline_mode<synchronous>, transform_indices = @transform_6, window_bounds = array<i64: 4, 1, 8>}, {pipeline_mode = #tpu.pipeline_mode<synchronous>, transform_indices = @transform_7, window_bounds = array<i64: 4, 1, 8>}, {transform_indices = @transform_8, window_bounds = array<i64: 1, 4, 8, 8>}, {transform_indices = @transform_9, window_bounds = array<i64: 1, 8, 32>}]} {
    %c0_i32 = arith.constant 0 : i32
    %0 = arith.cmpi eq, %arg1, %c0_i32 : i32
    %1 = arith.extui %0 : i1 to i32
    %c0_i32_0 = arith.constant 0 : i32
    %2 = arith.cmpi ne, %1, %c0_i32_0 : i32
    scf.if %2 {
      %c0_93 = arith.constant 0 : index
      %c0_94 = arith.constant 0 : index
      %c0_95 = arith.constant 0 : index
      %117 = vector.load %arg3[%c0_93, %c0_94, %c0_95] : memref<1x8x32xf32, #tpu.memory_space<vmem>>, vector<1x8x32xf32>
      %118 = vector.shape_cast %117 : vector<1x8x32xf32> to vector<8x32xf32>
      %c0_96 = arith.constant 0 : index
      %c0_97 = arith.constant 0 : index
      %c0_98 = arith.constant 0 : index
      %119 = vector.load %arg5[%c0_96, %c0_97, %c0_98] : memref<4x32x8xf32, #tpu.memory_space<vmem>>, vector<1x32x8xf32>
      %120 = vector.shape_cast %119 : vector<1x32x8xf32> to vector<32x8xf32>
      %cst_99 = arith.constant dense<0.000000e+00> : vector<8x8xf32>
      %121 = tpu.matmul %118, %120, %cst_99 {dimension_numbers = #tpu.dot_dimension_numbers<[1], [0], [0], [1], [0, 0, 1, 1], [], []>} : vector<8x32xf32>, vector<32x8xf32>, vector<8x8xf32> -> vector<8x8xf32>
      %c0_100 = arith.constant 0 : index
      %c0_101 = arith.constant 0 : index
      %c0_102 = arith.constant 0 : index
      %122 = vector.load %arg8[%c0_100, %c0_101, %c0_102] : memref<4x1x8xf32, #tpu.memory_space<vmem>>, vector<1x1x8xf32>
      %123 = vector.shape_cast %122 : vector<1x1x8xf32> to vector<1x8xf32>
      %124 = vector.broadcast %123 : vector<1x8xf32> to vector<8x8xf32>
      %125 = arith.addf %121, %124 : vector<8x8xf32>
      %c0_103 = arith.constant 0 : index
      %c0_104 = arith.constant 0 : index
      %c0_105 = arith.constant 0 : index
      %126 = vector.load %arg6[%c0_103, %c0_104, %c0_105] : memref<4x32x8xf32, #tpu.memory_space<vmem>>, vector<1x32x8xf32>
      %127 = vector.shape_cast %126 : vector<1x32x8xf32> to vector<32x8xf32>
      %cst_106 = arith.constant dense<0.000000e+00> : vector<8x8xf32>
      %128 = tpu.matmul %118, %127, %cst_106 {dimension_numbers = #tpu.dot_dimension_numbers<[1], [0], [0], [1], [0, 0, 1, 1], [], []>} : vector<8x32xf32>, vector<32x8xf32>, vector<8x8xf32> -> vector<8x8xf32>
      %c0_107 = arith.constant 0 : index
      %c0_108 = arith.constant 0 : index
      %c0_109 = arith.constant 0 : index
      %129 = vector.load %arg9[%c0_107, %c0_108, %c0_109] : memref<4x1x8xf32, #tpu.memory_space<vmem>>, vector<1x1x8xf32>
      %130 = vector.shape_cast %129 : vector<1x1x8xf32> to vector<1x8xf32>
      %131 = vector.broadcast %130 : vector<1x8xf32> to vector<8x8xf32>
      %132 = arith.addf %128, %131 : vector<8x8xf32>
      %c0_110 = arith.constant 0 : index
      %c0_111 = arith.constant 0 : index
      %c0_112 = arith.constant 0 : index
      %133 = vector.load %arg12[%c0_110, %c0_111, %c0_112] : memref<4x8x8xf32, #tpu.memory_space<vmem>>, vector<1x8x8xf32>
      %134 = vector.shape_cast %133 : vector<1x8x8xf32> to vector<8x8xf32>
      %135 = vector.shape_cast %125 : vector<8x8xf32> to vector<1x8x8xf32>
      tpu.vector_store %arg12[%c0_110, %c0_111, %c0_112], %135 {strides = array<i32>} : memref<4x8x8xf32, #tpu.memory_space<vmem>>, vector<1x8x8xf32>,
      %c0_113 = arith.constant 0 : index
      %c0_114 = arith.constant 0 : index
      %c0_115 = arith.constant 0 : index
      %136 = vector.load %arg13[%c0_113, %c0_114, %c0_115] : memref<4x8x8xf32, #tpu.memory_space<vmem>>, vector<1x8x8xf32>
      %137 = vector.shape_cast %136 : vector<1x8x8xf32> to vector<8x8xf32>
      %138 = vector.shape_cast %132 : vector<8x8xf32> to vector<1x8x8xf32>
      tpu.vector_store %arg13[%c0_113, %c0_114, %c0_115], %138 {strides = array<i32>} : memref<4x8x8xf32, #tpu.memory_space<vmem>>, vector<1x8x8xf32>,
      %c1_116 = arith.constant 1 : index
      %c0_117 = arith.constant 0 : index
      %c0_118 = arith.constant 0 : index
      %139 = vector.load %arg5[%c1_116, %c0_117, %c0_118] : memref<4x32x8xf32, #tpu.memory_space<vmem>>, vector<1x32x8xf32>
      %140 = vector.shape_cast %139 : vector<1x32x8xf32> to vector<32x8xf32>
      %cst_119 = arith.constant dense<0.000000e+00> : vector<8x8xf32>
      %141 = tpu.matmul %118, %140, %cst_119 {dimension_numbers = #tpu.dot_dimension_numbers<[1], [0], [0], [1], [0, 0, 1, 1], [], []>} : vector<8x32xf32>, vector<32x8xf32>, vector<8x8xf32> -> vector<8x8xf32>
      %c1_120 = arith.constant 1 : index
      %c0_121 = arith.constant 0 : index
      %c0_122 = arith.constant 0 : index
      %142 = vector.load %arg8[%c1_120, %c0_121, %c0_122] : memref<4x1x8xf32, #tpu.memory_space<vmem>>, vector<1x1x8xf32>
      %143 = vector.shape_cast %142 : vector<1x1x8xf32> to vector<1x8xf32>
      %144 = vector.broadcast %143 : vector<1x8xf32> to vector<8x8xf32>
      %145 = arith.addf %141, %144 : vector<8x8xf32>
      %c1_123 = arith.constant 1 : index
      %c0_124 = arith.constant 0 : index
      %c0_125 = arith.constant 0 : index
      %146 = vector.load %arg6[%c1_123, %c0_124, %c0_125] : memref<4x32x8xf32, #tpu.memory_space<vmem>>, vector<1x32x8xf32>
      %147 = vector.shape_cast %146 : vector<1x32x8xf32> to vector<32x8xf32>
      %cst_126 = arith.constant dense<0.000000e+00> : vector<8x8xf32>
      %148 = tpu.matmul %118, %147, %cst_126 {dimension_numbers = #tpu.dot_dimension_numbers<[1], [0], [0], [1], [0, 0, 1, 1], [], []>} : vector<8x32xf32>, vector<32x8xf32>, vector<8x8xf32> -> vector<8x8xf32>
      %c1_127 = arith.constant 1 : index
      %c0_128 = arith.constant 0 : index
      %c0_129 = arith.constant 0 : index
      %149 = vector.load %arg9[%c1_127, %c0_128, %c0_129] : memref<4x1x8xf32, #tpu.memory_space<vmem>>, vector<1x1x8xf32>
      %150 = vector.shape_cast %149 : vector<1x1x8xf32> to vector<1x8xf32>
      %151 = vector.broadcast %150 : vector<1x8xf32> to vector<8x8xf32>
      %152 = arith.addf %148, %151 : vector<8x8xf32>
      %c1_130 = arith.constant 1 : index
      %c0_131 = arith.constant 0 : index
      %c0_132 = arith.constant 0 : index
      %153 = vector.load %arg12[%c1_130, %c0_131, %c0_132] : memref<4x8x8xf32, #tpu.memory_space<vmem>>, vector<1x8x8xf32>
      %154 = vector.shape_cast %153 : vector<1x8x8xf32> to vector<8x8xf32>
      %155 = vector.shape_cast %145 : vector<8x8xf32> to vector<1x8x8xf32>
      tpu.vector_store %arg12[%c1_130, %c0_131, %c0_132], %155 {strides = array<i32>} : memref<4x8x8xf32, #tpu.memory_space<vmem>>, vector<1x8x8xf32>,
      %c1_133 = arith.constant 1 : index
      %c0_134 = arith.constant 0 : index
      %c0_135 = arith.constant 0 : index
      %156 = vector.load %arg13[%c1_133, %c0_134, %c0_135] : memref<4x8x8xf32, #tpu.memory_space<vmem>>, vector<1x8x8xf32>
      %157 = vector.shape_cast %156 : vector<1x8x8xf32> to vector<8x8xf32>
      %158 = vector.shape_cast %152 : vector<8x8xf32> to vector<1x8x8xf32>
      tpu.vector_store %arg13[%c1_133, %c0_134, %c0_135], %158 {strides = array<i32>} : memref<4x8x8xf32, #tpu.memory_space<vmem>>, vector<1x8x8xf32>,
      %c2_136 = arith.constant 2 : index
      %c0_137 = arith.constant 0 : index
      %c0_138 = arith.constant 0 : index
      %159 = vector.load %arg5[%c2_136, %c0_137, %c0_138] : memref<4x32x8xf32, #tpu.memory_space<vmem>>, vector<1x32x8xf32>
      %160 = vector.shape_cast %159 : vector<1x32x8xf32> to vector<32x8xf32>
      %cst_139 = arith.constant dense<0.000000e+00> : vector<8x8xf32>
      %161 = tpu.matmul %118, %160, %cst_139 {dimension_numbers = #tpu.dot_dimension_numbers<[1], [0], [0], [1], [0, 0, 1, 1], [], []>} : vector<8x32xf32>, vector<32x8xf32>, vector<8x8xf32> -> vector<8x8xf32>
      %c2_140 = arith.constant 2 : index
      %c0_141 = arith.constant 0 : index
      %c0_142 = arith.constant 0 : index
      %162 = vector.load %arg8[%c2_140, %c0_141, %c0_142] : memref<4x1x8xf32, #tpu.memory_space<vmem>>, vector<1x1x8xf32>
      %163 = vector.shape_cast %162 : vector<1x1x8xf32> to vector<1x8xf32>
      %164 = vector.broadcast %163 : vector<1x8xf32> to vector<8x8xf32>
      %165 = arith.addf %161, %164 : vector<8x8xf32>
      %c2_143 = arith.constant 2 : index
      %c0_144 = arith.constant 0 : index
      %c0_145 = arith.constant 0 : index
      %166 = vector.load %arg6[%c2_143, %c0_144, %c0_145] : memref<4x32x8xf32, #tpu.memory_space<vmem>>, vector<1x32x8xf32>
      %167 = vector.shape_cast %166 : vector<1x32x8xf32> to vector<32x8xf32>
      %cst_146 = arith.constant dense<0.000000e+00> : vector<8x8xf32>
      %168 = tpu.matmul %118, %167, %cst_146 {dimension_numbers = #tpu.dot_dimension_numbers<[1], [0], [0], [1], [0, 0, 1, 1], [], []>} : vector<8x32xf32>, vector<32x8xf32>, vector<8x8xf32> -> vector<8x8xf32>
      %c2_147 = arith.constant 2 : index
      %c0_148 = arith.constant 0 : index
      %c0_149 = arith.constant 0 : index
      %169 = vector.load %arg9[%c2_147, %c0_148, %c0_149] : memref<4x1x8xf32, #tpu.memory_space<vmem>>, vector<1x1x8xf32>
      %170 = vector.shape_cast %169 : vector<1x1x8xf32> to vector<1x8xf32>
      %171 = vector.broadcast %170 : vector<1x8xf32> to vector<8x8xf32>
      %172 = arith.addf %168, %171 : vector<8x8xf32>
      %c2_150 = arith.constant 2 : index
      %c0_151 = arith.constant 0 : index
      %c0_152 = arith.constant 0 : index
      %173 = vector.load %arg12[%c2_150, %c0_151, %c0_152] : memref<4x8x8xf32, #tpu.memory_space<vmem>>, vector<1x8x8xf32>
      %174 = vector.shape_cast %173 : vector<1x8x8xf32> to vector<8x8xf32>
      %175 = vector.shape_cast %165 : vector<8x8xf32> to vector<1x8x8xf32>
      tpu.vector_store %arg12[%c2_150, %c0_151, %c0_152], %175 {strides = array<i32>} : memref<4x8x8xf32, #tpu.memory_space<vmem>>, vector<1x8x8xf32>,
      %c2_153 = arith.constant 2 : index
      %c0_154 = arith.constant 0 : index
      %c0_155 = arith.constant 0 : index
      %176 = vector.load %arg13[%c2_153, %c0_154, %c0_155] : memref<4x8x8xf32, #tpu.memory_space<vmem>>, vector<1x8x8xf32>
      %177 = vector.shape_cast %176 : vector<1x8x8xf32> to vector<8x8xf32>
      %178 = vector.shape_cast %172 : vector<8x8xf32> to vector<1x8x8xf32>
      tpu.vector_store %arg13[%c2_153, %c0_154, %c0_155], %178 {strides = array<i32>} : memref<4x8x8xf32, #tpu.memory_space<vmem>>, vector<1x8x8xf32>,
      %c3_156 = arith.constant 3 : index
      %c0_157 = arith.constant 0 : index
      %c0_158 = arith.constant 0 : index
      %179 = vector.load %arg5[%c3_156, %c0_157, %c0_158] : memref<4x32x8xf32, #tpu.memory_space<vmem>>, vector<1x32x8xf32>
      %180 = vector.shape_cast %179 : vector<1x32x8xf32> to vector<32x8xf32>
      %cst_159 = arith.constant dense<0.000000e+00> : vector<8x8xf32>
      %181 = tpu.matmul %118, %180, %cst_159 {dimension_numbers = #tpu.dot_dimension_numbers<[1], [0], [0], [1], [0, 0, 1, 1], [], []>} : vector<8x32xf32>, vector<32x8xf32>, vector<8x8xf32> -> vector<8x8xf32>
      %c3_160 = arith.constant 3 : index
      %c0_161 = arith.constant 0 : index
      %c0_162 = arith.constant 0 : index
      %182 = vector.load %arg8[%c3_160, %c0_161, %c0_162] : memref<4x1x8xf32, #tpu.memory_space<vmem>>, vector<1x1x8xf32>
      %183 = vector.shape_cast %182 : vector<1x1x8xf32> to vector<1x8xf32>
      %184 = vector.broadcast %183 : vector<1x8xf32> to vector<8x8xf32>
      %185 = arith.addf %181, %184 : vector<8x8xf32>
      %c3_163 = arith.constant 3 : index
      %c0_164 = arith.constant 0 : index
      %c0_165 = arith.constant 0 : index
      %186 = vector.load %arg6[%c3_163, %c0_164, %c0_165] : memref<4x32x8xf32, #tpu.memory_space<vmem>>, vector<1x32x8xf32>
      %187 = vector.shape_cast %186 : vector<1x32x8xf32> to vector<32x8xf32>
      %cst_166 = arith.constant dense<0.000000e+00> : vector<8x8xf32>
      %188 = tpu.matmul %118, %187, %cst_166 {dimension_numbers = #tpu.dot_dimension_numbers<[1], [0], [0], [1], [0, 0, 1, 1], [], []>} : vector<8x32xf32>, vector<32x8xf32>, vector<8x8xf32> -> vector<8x8xf32>
      %c3_167 = arith.constant 3 : index
      %c0_168 = arith.constant 0 : index
      %c0_169 = arith.constant 0 : index
      %189 = vector.load %arg9[%c3_167, %c0_168, %c0_169] : memref<4x1x8xf32, #tpu.memory_space<vmem>>, vector<1x1x8xf32>
      %190 = vector.shape_cast %189 : vector<1x1x8xf32> to vector<1x8xf32>
      %191 = vector.broadcast %190 : vector<1x8xf32> to vector<8x8xf32>
      %192 = arith.addf %188, %191 : vector<8x8xf32>
      %c3_170 = arith.constant 3 : index
      %c0_171 = arith.constant 0 : index
      %c0_172 = arith.constant 0 : index
      %193 = vector.load %arg12[%c3_170, %c0_171, %c0_172] : memref<4x8x8xf32, #tpu.memory_space<vmem>>, vector<1x8x8xf32>
      %194 = vector.shape_cast %193 : vector<1x8x8xf32> to vector<8x8xf32>
      %195 = vector.shape_cast %185 : vector<8x8xf32> to vector<1x8x8xf32>
      tpu.vector_store %arg12[%c3_170, %c0_171, %c0_172], %195 {strides = array<i32>} : memref<4x8x8xf32, #tpu.memory_space<vmem>>, vector<1x8x8xf32>,
      %c3_173 = arith.constant 3 : index
      %c0_174 = arith.constant 0 : index
      %c0_175 = arith.constant 0 : index
      %196 = vector.load %arg13[%c3_173, %c0_174, %c0_175] : memref<4x8x8xf32, #tpu.memory_space<vmem>>, vector<1x8x8xf32>
      %197 = vector.shape_cast %196 : vector<1x8x8xf32> to vector<8x8xf32>
      %198 = vector.shape_cast %192 : vector<8x8xf32> to vector<1x8x8xf32>
      tpu.vector_store %arg13[%c3_173, %c0_174, %c0_175], %198 {strides = array<i32>} : memref<4x8x8xf32, #tpu.memory_space<vmem>>, vector<1x8x8xf32>,
    } else {
    }
    %c0 = arith.constant 0 : index
    %c0_1 = arith.constant 0 : index
    %c0_2 = arith.constant 0 : index
    %3 = vector.load %arg2[%c0, %c0_1, %c0_2] : memref<1x8x32xf32, #tpu.memory_space<vmem>>, vector<1x8x32xf32>
    %4 = vector.shape_cast %3 : vector<1x8x32xf32> to vector<8x32xf32>
    %c0_3 = arith.constant 0 : index
    %c0_4 = arith.constant 0 : index
    %c0_5 = arith.constant 0 : index
    %5 = vector.load %arg4[%c0_3, %c0_4, %c0_5] : memref<4x32x8xf32, #tpu.memory_space<vmem>>, vector<1x32x8xf32>
    %6 = vector.shape_cast %5 : vector<1x32x8xf32> to vector<32x8xf32>
    %cst = arith.constant dense<0.000000e+00> : vector<8x8xf32>
    %7 = tpu.matmul %4, %6, %cst {dimension_numbers = #tpu.dot_dimension_numbers<[1], [0], [0], [1], [0, 0, 1, 1], [], []>} : vector<8x32xf32>, vector<32x8xf32>, vector<8x8xf32> -> vector<8x8xf32>
    %c0_6 = arith.constant 0 : index
    %c0_7 = arith.constant 0 : index
    %c0_8 = arith.constant 0 : index
    %8 = vector.load %arg7[%c0_6, %c0_7, %c0_8] : memref<4x1x8xf32, #tpu.memory_space<vmem>>, vector<1x1x8xf32>
    %9 = vector.shape_cast %8 : vector<1x1x8xf32> to vector<1x8xf32>
    %10 = vector.broadcast %9 : vector<1x8xf32> to vector<8x8xf32>
    %11 = arith.addf %7, %10 : vector<8x8xf32>
    %c0_9 = arith.constant 0 : index
    %c0_10 = arith.constant 0 : index
    %c0_11 = arith.constant 0 : index
    %12 = vector.load %arg12[%c0_9, %c0_10, %c0_11] : memref<4x8x8xf32, #tpu.memory_space<vmem>>, vector<1x8x8xf32>
    %13 = vector.shape_cast %12 : vector<1x8x8xf32> to vector<8x8xf32>
    %cst_12 = arith.constant dense<0.000000e+00> : vector<8x8xf32>
    %14 = tpu.matmul %11, %13, %cst_12 {dimension_numbers = #tpu.dot_dimension_numbers<[1], [1], [0], [0], [0, 0, 1, 0], [], []>} : vector<8x8xf32>, vector<8x8xf32>, vector<8x8xf32> -> vector<8x8xf32>
    %cst_13 = arith.constant dense<0xFF800000> : vector<8xf32>
    %15 = vector.multi_reduction <maximumf>, %14, %cst_13 [1] : vector<8x8xf32> to vector<8xf32>
    %16 = vector.shape_cast %15 : vector<8xf32> to vector<8x1xf32>
    %17 = vector.broadcast %16 : vector<8x1xf32> to vector<8x8xf32>
    %18 = arith.subf %14, %17 : vector<8x8xf32>
    %19 = math.exp %18 : vector<8x8xf32>
    %cst_14 = arith.constant dense<0.000000e+00> : vector<8xf32>
    %20 = vector.multi_reduction <add>, %19, %cst_14 [1] : vector<8x8xf32> to vector<8xf32>
    %21 = vector.shape_cast %20 : vector<8xf32> to vector<8x1xf32>
    %22 = tpu.reciprocal %21 : vector<8x1xf32> -> vector<8x1xf32>
    %23 = vector.broadcast %22 : vector<8x1xf32> to vector<8x8xf32>
    %24 = arith.mulf %19, %23 : vector<8x8xf32>
    %c0_15 = arith.constant 0 : index
    %c0_16 = arith.constant 0 : index
    %c0_17 = arith.constant 0 : index
    %c0_18 = arith.constant 0 : index
    %25 = vector.load %arg10[%c0_15, %c0_16, %c0_17, %c0_18] : memref<1x4x8x8xf32, #tpu.memory_space<vmem>>, vector<1x1x8x8xf32>
    %26 = vector.shape_cast %25 : vector<1x1x8x8xf32> to vector<8x8xf32>
    %27 = vector.shape_cast %24 : vector<8x8xf32> to vector<1x1x8x8xf32>
    tpu.vector_store %arg10[%c0_15, %c0_16, %c0_17, %c0_18], %27 {strides = array<i32>} : memref<1x4x8x8xf32, #tpu.memory_space<vmem>>, vector<1x1x8x8xf32>,
    %c0_19 = arith.constant 0 : index
    %c0_20 = arith.constant 0 : index
    %c0_21 = arith.constant 0 : index
    %28 = vector.load %arg13[%c0_19, %c0_20, %c0_21] : memref<4x8x8xf32, #tpu.memory_space<vmem>>, vector<1x8x8xf32>
    %29 = vector.shape_cast %28 : vector<1x8x8xf32> to vector<8x8xf32>
    %cst_22 = arith.constant dense<0.000000e+00> : vector<8x8xf32>
    %30 = tpu.matmul %24, %29, %cst_22 {dimension_numbers = #tpu.dot_dimension_numbers<[1], [0], [0], [1], [0, 0, 1, 1], [], []>} : vector<8x8xf32>, vector<8x8xf32>, vector<8x8xf32> -> vector<8x8xf32>
    %c0_23 = arith.constant 0 : index
    %c0_24 = arith.constant 0 : index
    %31 = vector.load %arg14[%c0_23, %c0_24] : memref<8x32xf32, #tpu.memory_space<vmem>>, vector<8x8xf32>
    tpu.vector_store %arg14[%c0_23, %c0_24], %30 {strides = array<i32>} : memref<8x32xf32, #tpu.memory_space<vmem>>, vector<8x8xf32>,
    %c1 = arith.constant 1 : index
    %c0_25 = arith.constant 0 : index
    %c0_26 = arith.constant 0 : index
    %32 = vector.load %arg4[%c1, %c0_25, %c0_26] : memref<4x32x8xf32, #tpu.memory_space<vmem>>, vector<1x32x8xf32>
    %33 = vector.shape_cast %32 : vector<1x32x8xf32> to vector<32x8xf32>
    %cst_27 = arith.constant dense<0.000000e+00> : vector<8x8xf32>
    %34 = tpu.matmul %4, %33, %cst_27 {dimension_numbers = #tpu.dot_dimension_numbers<[1], [0], [0], [1], [0, 0, 1, 1], [], []>} : vector<8x32xf32>, vector<32x8xf32>, vector<8x8xf32> -> vector<8x8xf32>
    %c1_28 = arith.constant 1 : index
    %c0_29 = arith.constant 0 : index
    %c0_30 = arith.constant 0 : index
    %35 = vector.load %arg7[%c1_28, %c0_29, %c0_30] : memref<4x1x8xf32, #tpu.memory_space<vmem>>, vector<1x1x8xf32>
    %36 = vector.shape_cast %35 : vector<1x1x8xf32> to vector<1x8xf32>
    %37 = vector.broadcast %36 : vector<1x8xf32> to vector<8x8xf32>
    %38 = arith.addf %34, %37 : vector<8x8xf32>
    %c1_31 = arith.constant 1 : index
    %c0_32 = arith.constant 0 : index
    %c0_33 = arith.constant 0 : index
    %39 = vector.load %arg12[%c1_31, %c0_32, %c0_33] : memref<4x8x8xf32, #tpu.memory_space<vmem>>, vector<1x8x8xf32>
    %40 = vector.shape_cast %39 : vector<1x8x8xf32> to vector<8x8xf32>
    %cst_34 = arith.constant dense<0.000000e+00> : vector<8x8xf32>
    %41 = tpu.matmul %38, %40, %cst_34 {dimension_numbers = #tpu.dot_dimension_numbers<[1], [1], [0], [0], [0, 0, 1, 0], [], []>} : vector<8x8xf32>, vector<8x8xf32>, vector<8x8xf32> -> vector<8x8xf32>
    %cst_35 = arith.constant dense<0xFF800000> : vector<8xf32>
    %42 = vector.multi_reduction <maximumf>, %41, %cst_35 [1] : vector<8x8xf32> to vector<8xf32>
    %43 = vector.shape_cast %42 : vector<8xf32> to vector<8x1xf32>
    %44 = vector.broadcast %43 : vector<8x1xf32> to vector<8x8xf32>
    %45 = arith.subf %41, %44 : vector<8x8xf32>
    %46 = math.exp %45 : vector<8x8xf32>
    %cst_36 = arith.constant dense<0.000000e+00> : vector<8xf32>
    %47 = vector.multi_reduction <add>, %46, %cst_36 [1] : vector<8x8xf32> to vector<8xf32>
    %48 = vector.shape_cast %47 : vector<8xf32> to vector<8x1xf32>
    %49 = tpu.reciprocal %48 : vector<8x1xf32> -> vector<8x1xf32>
    %50 = vector.broadcast %49 : vector<8x1xf32> to vector<8x8xf32>
    %51 = arith.mulf %46, %50 : vector<8x8xf32>
    %c0_37 = arith.constant 0 : index
    %c1_38 = arith.constant 1 : index
    %c0_39 = arith.constant 0 : index
    %c0_40 = arith.constant 0 : index
    %52 = vector.load %arg10[%c0_37, %c1_38, %c0_39, %c0_40] : memref<1x4x8x8xf32, #tpu.memory_space<vmem>>, vector<1x1x8x8xf32>
    %53 = vector.shape_cast %52 : vector<1x1x8x8xf32> to vector<8x8xf32>
    %54 = vector.shape_cast %51 : vector<8x8xf32> to vector<1x1x8x8xf32>
    tpu.vector_store %arg10[%c0_37, %c1_38, %c0_39, %c0_40], %54 {strides = array<i32>} : memref<1x4x8x8xf32, #tpu.memory_space<vmem>>, vector<1x1x8x8xf32>,
    %c1_41 = arith.constant 1 : index
    %c0_42 = arith.constant 0 : index
    %c0_43 = arith.constant 0 : index
    %55 = vector.load %arg13[%c1_41, %c0_42, %c0_43] : memref<4x8x8xf32, #tpu.memory_space<vmem>>, vector<1x8x8xf32>
    %56 = vector.shape_cast %55 : vector<1x8x8xf32> to vector<8x8xf32>
    %cst_44 = arith.constant dense<0.000000e+00> : vector<8x8xf32>
    %57 = tpu.matmul %51, %56, %cst_44 {dimension_numbers = #tpu.dot_dimension_numbers<[1], [0], [0], [1], [0, 0, 1, 1], [], []>} : vector<8x8xf32>, vector<8x8xf32>, vector<8x8xf32> -> vector<8x8xf32>
    %c0_45 = arith.constant 0 : index
    %c8 = arith.constant 8 : index
    %58 = vector.load %arg14[%c0_45, %c8] : memref<8x32xf32, #tpu.memory_space<vmem>>, vector<8x8xf32>
    tpu.vector_store %arg14[%c0_45, %c8], %57 {strides = array<i32>} : memref<8x32xf32, #tpu.memory_space<vmem>>, vector<8x8xf32>,
    %c2 = arith.constant 2 : index
    %c0_46 = arith.constant 0 : index
    %c0_47 = arith.constant 0 : index
    %59 = vector.load %arg4[%c2, %c0_46, %c0_47] : memref<4x32x8xf32, #tpu.memory_space<vmem>>, vector<1x32x8xf32>
    %60 = vector.shape_cast %59 : vector<1x32x8xf32> to vector<32x8xf32>
    %cst_48 = arith.constant dense<0.000000e+00> : vector<8x8xf32>
    %61 = tpu.matmul %4, %60, %cst_48 {dimension_numbers = #tpu.dot_dimension_numbers<[1], [0], [0], [1], [0, 0, 1, 1], [], []>} : vector<8x32xf32>, vector<32x8xf32>, vector<8x8xf32> -> vector<8x8xf32>
    %c2_49 = arith.constant 2 : index
    %c0_50 = arith.constant 0 : index
    %c0_51 = arith.constant 0 : index
    %62 = vector.load %arg7[%c2_49, %c0_50, %c0_51] : memref<4x1x8xf32, #tpu.memory_space<vmem>>, vector<1x1x8xf32>
    %63 = vector.shape_cast %62 : vector<1x1x8xf32> to vector<1x8xf32>
    %64 = vector.broadcast %63 : vector<1x8xf32> to vector<8x8xf32>
    %65 = arith.addf %61, %64 : vector<8x8xf32>
    %c2_52 = arith.constant 2 : index
    %c0_53 = arith.constant 0 : index
    %c0_54 = arith.constant 0 : index
    %66 = vector.load %arg12[%c2_52, %c0_53, %c0_54] : memref<4x8x8xf32, #tpu.memory_space<vmem>>, vector<1x8x8xf32>
    %67 = vector.shape_cast %66 : vector<1x8x8xf32> to vector<8x8xf32>
    %cst_55 = arith.constant dense<0.000000e+00> : vector<8x8xf32>
    %68 = tpu.matmul %65, %67, %cst_55 {dimension_numbers = #tpu.dot_dimension_numbers<[1], [1], [0], [0], [0, 0, 1, 0], [], []>} : vector<8x8xf32>, vector<8x8xf32>, vector<8x8xf32> -> vector<8x8xf32>
    %cst_56 = arith.constant dense<0xFF800000> : vector<8xf32>
    %69 = vector.multi_reduction <maximumf>, %68, %cst_56 [1] : vector<8x8xf32> to vector<8xf32>
    %70 = vector.shape_cast %69 : vector<8xf32> to vector<8x1xf32>
    %71 = vector.broadcast %70 : vector<8x1xf32> to vector<8x8xf32>
    %72 = arith.subf %68, %71 : vector<8x8xf32>
    %73 = math.exp %72 : vector<8x8xf32>
    %cst_57 = arith.constant dense<0.000000e+00> : vector<8xf32>
    %74 = vector.multi_reduction <add>, %73, %cst_57 [1] : vector<8x8xf32> to vector<8xf32>
    %75 = vector.shape_cast %74 : vector<8xf32> to vector<8x1xf32>
    %76 = tpu.reciprocal %75 : vector<8x1xf32> -> vector<8x1xf32>
    %77 = vector.broadcast %76 : vector<8x1xf32> to vector<8x8xf32>
    %78 = arith.mulf %73, %77 : vector<8x8xf32>
    %c0_58 = arith.constant 0 : index
    %c2_59 = arith.constant 2 : index
    %c0_60 = arith.constant 0 : index
    %c0_61 = arith.constant 0 : index
    %79 = vector.load %arg10[%c0_58, %c2_59, %c0_60, %c0_61] : memref<1x4x8x8xf32, #tpu.memory_space<vmem>>, vector<1x1x8x8xf32>
    %80 = vector.shape_cast %79 : vector<1x1x8x8xf32> to vector<8x8xf32>
    %81 = vector.shape_cast %78 : vector<8x8xf32> to vector<1x1x8x8xf32>
    tpu.vector_store %arg10[%c0_58, %c2_59, %c0_60, %c0_61], %81 {strides = array<i32>} : memref<1x4x8x8xf32, #tpu.memory_space<vmem>>, vector<1x1x8x8xf32>,
    %c2_62 = arith.constant 2 : index
    %c0_63 = arith.constant 0 : index
    %c0_64 = arith.constant 0 : index
    %82 = vector.load %arg13[%c2_62, %c0_63, %c0_64] : memref<4x8x8xf32, #tpu.memory_space<vmem>>, vector<1x8x8xf32>
    %83 = vector.shape_cast %82 : vector<1x8x8xf32> to vector<8x8xf32>
    %cst_65 = arith.constant dense<0.000000e+00> : vector<8x8xf32>
    %84 = tpu.matmul %78, %83, %cst_65 {dimension_numbers = #tpu.dot_dimension_numbers<[1], [0], [0], [1], [0, 0, 1, 1], [], []>} : vector<8x8xf32>, vector<8x8xf32>, vector<8x8xf32> -> vector<8x8xf32>
    %c0_66 = arith.constant 0 : index
    %c16 = arith.constant 16 : index
    %85 = vector.load %arg14[%c0_66, %c16] : memref<8x32xf32, #tpu.memory_space<vmem>>, vector<8x8xf32>
    tpu.vector_store %arg14[%c0_66, %c16], %84 {strides = array<i32>} : memref<8x32xf32, #tpu.memory_space<vmem>>, vector<8x8xf32>,
    %c3 = arith.constant 3 : index
    %c0_67 = arith.constant 0 : index
    %c0_68 = arith.constant 0 : index
    %86 = vector.load %arg4[%c3, %c0_67, %c0_68] : memref<4x32x8xf32, #tpu.memory_space<vmem>>, vector<1x32x8xf32>
    %87 = vector.shape_cast %86 : vector<1x32x8xf32> to vector<32x8xf32>
    %cst_69 = arith.constant dense<0.000000e+00> : vector<8x8xf32>
    %88 = tpu.matmul %4, %87, %cst_69 {dimension_numbers = #tpu.dot_dimension_numbers<[1], [0], [0], [1], [0, 0, 1, 1], [], []>} : vector<8x32xf32>, vector<32x8xf32>, vector<8x8xf32> -> vector<8x8xf32>
    %c3_70 = arith.constant 3 : index
    %c0_71 = arith.constant 0 : index
    %c0_72 = arith.constant 0 : index
    %89 = vector.load %arg7[%c3_70, %c0_71, %c0_72] : memref<4x1x8xf32, #tpu.memory_space<vmem>>, vector<1x1x8xf32>
    %90 = vector.shape_cast %89 : vector<1x1x8xf32> to vector<1x8xf32>
    %91 = vector.broadcast %90 : vector<1x8xf32> to vector<8x8xf32>
    %92 = arith.addf %88, %91 : vector<8x8xf32>
    %c3_73 = arith.constant 3 : index
    %c0_74 = arith.constant 0 : index
    %c0_75 = arith.constant 0 : index
    %93 = vector.load %arg12[%c3_73, %c0_74, %c0_75] : memref<4x8x8xf32, #tpu.memory_space<vmem>>, vector<1x8x8xf32>
    %94 = vector.shape_cast %93 : vector<1x8x8xf32> to vector<8x8xf32>
    %cst_76 = arith.constant dense<0.000000e+00> : vector<8x8xf32>
    %95 = tpu.matmul %92, %94, %cst_76 {dimension_numbers = #tpu.dot_dimension_numbers<[1], [1], [0], [0], [0, 0, 1, 0], [], []>} : vector<8x8xf32>, vector<8x8xf32>, vector<8x8xf32> -> vector<8x8xf32>
    %cst_77 = arith.constant dense<0xFF800000> : vector<8xf32>
    %96 = vector.multi_reduction <maximumf>, %95, %cst_77 [1] : vector<8x8xf32> to vector<8xf32>
    %97 = vector.shape_cast %96 : vector<8xf32> to vector<8x1xf32>
    %98 = vector.broadcast %97 : vector<8x1xf32> to vector<8x8xf32>
    %99 = arith.subf %95, %98 : vector<8x8xf32>
    %100 = math.exp %99 : vector<8x8xf32>
    %cst_78 = arith.constant dense<0.000000e+00> : vector<8xf32>
    %101 = vector.multi_reduction <add>, %100, %cst_78 [1] : vector<8x8xf32> to vector<8xf32>
    %102 = vector.shape_cast %101 : vector<8xf32> to vector<8x1xf32>
    %103 = tpu.reciprocal %102 : vector<8x1xf32> -> vector<8x1xf32>
    %104 = vector.broadcast %103 : vector<8x1xf32> to vector<8x8xf32>
    %105 = arith.mulf %100, %104 : vector<8x8xf32>
    %c0_79 = arith.constant 0 : index
    %c3_80 = arith.constant 3 : index
    %c0_81 = arith.constant 0 : index
    %c0_82 = arith.constant 0 : index
    %106 = vector.load %arg10[%c0_79, %c3_80, %c0_81, %c0_82] : memref<1x4x8x8xf32, #tpu.memory_space<vmem>>, vector<1x1x8x8xf32>
    %107 = vector.shape_cast %106 : vector<1x1x8x8xf32> to vector<8x8xf32>
    %108 = vector.shape_cast %105 : vector<8x8xf32> to vector<1x1x8x8xf32>
    tpu.vector_store %arg10[%c0_79, %c3_80, %c0_81, %c0_82], %108 {strides = array<i32>} : memref<1x4x8x8xf32, #tpu.memory_space<vmem>>, vector<1x1x8x8xf32>,
    %c3_83 = arith.constant 3 : index
    %c0_84 = arith.constant 0 : index
    %c0_85 = arith.constant 0 : index
    %109 = vector.load %arg13[%c3_83, %c0_84, %c0_85] : memref<4x8x8xf32, #tpu.memory_space<vmem>>, vector<1x8x8xf32>
    %110 = vector.shape_cast %109 : vector<1x8x8xf32> to vector<8x8xf32>
    %cst_86 = arith.constant dense<0.000000e+00> : vector<8x8xf32>
    %111 = tpu.matmul %105, %110, %cst_86 {dimension_numbers = #tpu.dot_dimension_numbers<[1], [0], [0], [1], [0, 0, 1, 1], [], []>} : vector<8x8xf32>, vector<8x8xf32>, vector<8x8xf32> -> vector<8x8xf32>
    %c0_87 = arith.constant 0 : index
    %c24 = arith.constant 24 : index
    %112 = vector.load %arg14[%c0_87, %c24] : memref<8x32xf32, #tpu.memory_space<vmem>>, vector<8x8xf32>
    tpu.vector_store %arg14[%c0_87, %c24], %111 {strides = array<i32>} : memref<8x32xf32, #tpu.memory_space<vmem>>, vector<8x8xf32>,
    %c0_88 = arith.constant 0 : index
    %c0_89 = arith.constant 0 : index
    %113 = vector.load %arg14[%c0_88, %c0_89] : memref<8x32xf32, #tpu.memory_space<vmem>>, vector<8x32xf32>
    %c0_90 = arith.constant 0 : index
    %c0_91 = arith.constant 0 : index
    %c0_92 = arith.constant 0 : index
    %114 = vector.load %arg11[%c0_90, %c0_91, %c0_92] : memref<1x8x32xf32, #tpu.memory_space<vmem>>, vector<1x8x32xf32>
    %115 = vector.shape_cast %114 : vector<1x8x32xf32> to vector<8x32xf32>
    %116 = vector.shape_cast %113 : vector<8x32xf32> to vector<1x8x32xf32>
    tpu.vector_store %arg11[%c0_90, %c0_91, %c0_92], %116 {strides = array<i32>} : memref<1x8x32xf32, #tpu.memory_space<vmem>>, vector<1x8x32xf32>,
    return
  }
  func.func @transform_0(%arg0: i32, %arg1: i32) -> (i32, i32, i32) {
    %c0_i32 = arith.constant 0 : i32
    %c0_i32_0 = arith.constant 0 : i32
    return %arg0, %arg1, %c0_i32 : i32, i32, i32
  }
  func.func @transform_1(%arg0: i32, %arg1: i32) -> (i32, i32, i32) {
    %c0_i32 = arith.constant 0 : i32
    %c0_i32_0 = arith.constant 0 : i32
    %c0_i32_1 = arith.constant 0 : i32
    return %arg0, %c0_i32, %c0_i32_0 : i32, i32, i32
  }
  func.func @transform_2(%arg0: i32, %arg1: i32) -> (i32, i32, i32) {
    %c0_i32 = arith.constant 0 : i32
    %c0_i32_0 = arith.constant 0 : i32
    %c0_i32_1 = arith.constant 0 : i32
    %c0_i32_2 = arith.constant 0 : i32
    return %c0_i32, %c0_i32_0, %c0_i32_1 : i32, i32, i32
  }
  func.func @transform_3(%arg0: i32, %arg1: i32) -> (i32, i32, i32) {
    %c0_i32 = arith.constant 0 : i32
    %c0_i32_0 = arith.constant 0 : i32
    %c0_i32_1 = arith.constant 0 : i32
    %c0_i32_2 = arith.constant 0 : i32
    return %c0_i32, %c0_i32_0, %c0_i32_1 : i32, i32, i32
  }
  func.func @transform_4(%arg0: i32, %arg1: i32) -> (i32, i32, i32) {
    %c0_i32 = arith.constant 0 : i32
    %c0_i32_0 = arith.constant 0 : i32
    %c0_i32_1 = arith.constant 0 : i32
    %c0_i32_2 = arith.constant 0 : i32
    return %c0_i32, %c0_i32_0, %c0_i32_1 : i32, i32, i32
  }
  func.func @transform_5(%arg0: i32, %arg1: i32) -> (i32, i32, i32) {
    %c0_i32 = arith.constant 0 : i32
    %c0_i32_0 = arith.constant 0 : i32
    %c0_i32_1 = arith.constant 0 : i32
    %c0_i32_2 = arith.constant 0 : i32
    return %c0_i32, %c0_i32_0, %c0_i32_1 : i32, i32, i32
  }
  func.func @transform_6(%arg0: i32, %arg1: i32) -> (i32, i32, i32) {
    %c0_i32 = arith.constant 0 : i32
    %c0_i32_0 = arith.constant 0 : i32
    %c0_i32_1 = arith.constant 0 : i32
    %c0_i32_2 = arith.constant 0 : i32
    return %c0_i32, %c0_i32_0, %c0_i32_1 : i32, i32, i32
  }
  func.func @transform_7(%arg0: i32, %arg1: i32) -> (i32, i32, i32) {
    %c0_i32 = arith.constant 0 : i32
    %c0_i32_0 = arith.constant 0 : i32
    %c0_i32_1 = arith.constant 0 : i32
    %c0_i32_2 = arith.constant 0 : i32
    return %c0_i32, %c0_i32_0, %c0_i32_1 : i32, i32, i32
  }
  func.func @transform_8(%arg0: i32, %arg1: i32) -> (i32, i32, i32, i32) {
    %c0_i32 = arith.constant 0 : i32
    %c0_i32_0 = arith.constant 0 : i32
    %c0_i32_1 = arith.constant 0 : i32
    return %arg0, %c0_i32, %arg1, %c0_i32_0 : i32, i32, i32, i32
  }
  func.func @transform_9(%arg0: i32, %arg1: i32) -> (i32, i32, i32) {
    %c0_i32 = arith.constant 0 : i32
    %c0_i32_0 = arith.constant 0 : i32
    return %arg0, %arg1, %c0_i32 : i32, i32, i32
  }
}

</mosaic_0001>

<bundles_post_ra>
// kernel: tpu_custom_call.1
= control target key start
LH: loop header
LB: loop body
LE: loop exit
PB: predicated region body
PF: predicated region fallthrough
CT: control target
= control target key end

     0   :  { %s3334_s0 = inlined_call_operand.vmem [shape: f32[2,8,32], index: 0, kind: input, shape index: {}]   ;;  %s3335_s1 = inlined_call_operand.vmem [shape: f32[2,8,32], index: 1, kind: input, shape index: {}]   ;;  %s3336_s2 = inlined_call_operand.vmem [shape: f32[4,32,8], index: 2, kind: input, shape index: {}]   ;;  %s3337_s3 = inlined_call_operand.vmem [shape: f32[4,32,8], index: 3, kind: input, shape index: {}]   ;;  %s3338_s4 = inlined_call_operand.vmem [shape: f32[4,32,8], index: 4, kind: input, shape index: {}]   ;;  %s3339_s5 = inlined_call_operand.vmem [shape: f32[4,1,8], index: 5, kind: input, shape index: {}]   ;;  %s3340_s6 = inlined_call_operand.vmem [shape: f32[4,1,8], index: 6, kind: input, shape index: {}]   ;;  %s3341_s7 = inlined_call_operand.vmem [shape: f32[4,1,8], index: 7, kind: input, shape index: {}]   ;;  %s3342_s8 = inlined_call_operand.hbm [shape: f32[2,4,8,8], index: 8, kind: output, shape index: {0}]   ;;  %s3343_s9 = inlined_call_operand.hbm [shape: f32[2,8,32], index: 9, kind: output, shape index: {1}]  }
   0x1   :  { %3345 = sst [smem:[#allocation11_spill]] %s3334_s0 }
   0x2   :  { %3346 = sst [smem:[#allocation12_spill]] %s3335_s1 }
   0x3   :  { %3347 = sst [smem:[#allocation13_spill]] %s3336_s2 }
   0x4   :  { %15 = vsyncpa [#allocation6], 0 }
   0x5   :  { %17 = vsyncpa [#allocation6 + $0x1], 0 }
   0x6   :  { %18 = vsyncpa [#allocation8], 0 }
   0x7   :  { %20 = vsyncpa [#allocation8 + $0x1], 0  ;;  %s2836_s30 = smov 0   ;;  %s2838_s10 = smov 0  }
   0x8   :  { %s2840_s11 = smov 0   ;;  %s2842_s12 = smov 0  }
   0x9   :  { %s2844_s13 = smov 0   ;;  %s2846_s14 = smov 0  }
   0xa LB: > { %s2239_s15 = sadd.s32 4294967295, %s2776_s14   ;;  %s2240_s16 = sadd.s32 4294967294, %s2776_s14   ;;  %s2776_s14 = sphi %s2846_s14, %s26_s14   ;;  %s2772_s13 = sphi %s2844_s13, %s3359_s13   ;;  %s2768_s12 = sphi %s2842_s12, %s3358_s12   ;;  %s2764_s11 = sphi %s2840_s11, %s3357_s11   ;;  %s2760_s10 = sphi %s2838_s10, %s3356_s10   ;;  %s2756_s30 = sphi %s2836_s30, %s3355_s30  }
   0xb   : > { %s38_s17 = sadd.s32 1, %s2772_s13  ;;  %s227_s18 = sadd.s32 1, %s2764_s11 }
   0xc   : > { %p40_p0 = scmp.ge.s32.totalorder %s38_s17, 2  ;;  %p237_p1 = scmp.ne.s32.totalorder %s2764_s11, %s2760_s10 }
   0xd   : > { %p238_p2 = scmp.eq.s32.totalorder %s2239_s15, 1  ;;  %p243_p3 = scmp.ne.s32.totalorder %s2760_s10, %s2756_s30 }
   0xe   : > { %s3361_s17 = smov (%p40_p0, %s38_s17), 0  ;;  %p244_p5 = scmp.eq.s32.totalorder %s2240_s16, 1 }
   0xf   : > { %p2876_p4 = por %p238_p2, %p237_p1  ;;  %s222_s20 = ssub.s32 %s2772_s13, %s3361_s17 }
  0x10   : > { %p2243_p6 = scmp.ge.s32.totalorder %s2776_s14, 1  ;;  %p225_p7 = scmp.eq.s32.totalorder %s222_s20, 0 }
  0x11   : > { %p2883_p8 = por %p244_p5, %p243_p3  ;;  %p325_p9 = scmp.lt.s32.totalorder %s2776_s14, 3 }
  0x12   : > { %s2889_s22 = scalar_select %p225_p7, %s2764_s11, %s227_s18  }
  0x13   : > { %p326_p10 = pnand %p2243_p6, %p325_p9 }
  0x14   : > { %p372_p11 = scmp.lt.s32.totalorder (!%p326_p10), %s2768_s12, 1  ;;  %s3350_s1 = sld [smem:[#allocation12_spill]] (!%p326_p10) }
  0x15   : > { %329 = sbr.rel (%p326_p10) target bundleno = 2623 (0xa3f), region = 52  ;;  %s3351_s2 = sld [smem:[#allocation13_spill]] (!%p326_p10) }
  0x16   : > { %s3352_s0 = sld [smem:[#allocation11_spill]] (!%p326_p10)  ;;  %s3160_s16 = sand.u32 (!%p326_p10), 1, %s2760_s10  }
  0x17   : > { %s2244_s18 = sshll.u32 (!%p326_p10), %s3160_s16, 5  ;;  %s2781_s26 = smov (!%p326_p10), 16  }
  0x18   : > { %s2339_s28 = sshll.u32 (!%p326_p10), %s2768_s12, 9 }
  0x19   : > { %s3258_s20 = scalar_lea.hbm (!%p326_p10), %s3342_s8, %s2339_s28 }
  0x1a   : > { %v391_v0 = vld [vmem:[%s3337_s3 + $0x18] sm:$0xff]  ;;  %v2778_v1 = vmov 0.0   ;;  %v390_v2 = vld [vmem:[%s3337_s3 + $0x10] sm:$0xff]  ;;  %vm2779_vm0 = vmmov 0   ;;  %s2902_s27 = scalar_select %p372_p11, %s2768_s12, 1  ;;  %v389_v3 = vld [vmem:[%s3337_s3 + $0x8] sm:$0xff] }
  0x1b   : > { %2416 = vmatprep.subr.mxu0 %v2778_v1  ;;  %2424 = vmatprep.mubr.msk.f32.mxu0 %vm2779_vm0, %v2778_v1  ;;  %v388_v4 = vld [vmem:[%s3337_s3] sm:$0xff]  ;;  %vm399_vm1 = vcmask 261120   ;;  %v2255_v6 = vld [vmem:[%s3337_s3 + $0x38] sm:$0xff]  ;;  %v2254_v8 = vld [vmem:[%s3337_s3 + $0x30] sm:$0xff]  ;;  %vm554_vm2 = vcmask 64512   ;;  %vm1571_vm3 = vcmask 130112  }
  0x1c   : > { %2417 = vmatpush3.msra.mxu0 %v391_v0  ;;  %2427 = vmatprep.subr.mxu1 %v2778_v1  ;;  %s2246_s15 = sshll.u32 %s2902_s27, 3  ;;  %v476_v7 = vld [vmem:[%s3338_s4 + $0x18] sm:$0xff]  ;;  %v475_v9 = vld [vmem:[%s3338_s4 + $0x10] sm:$0xff]  ;;  %v2253_v10 = vld [vmem:[%s3337_s3 + $0x28] sm:$0xff]  ;;  %vm1826_vm4 = vcmask 195712  }
  0x1d   : > { %2418 = vmatprep.subr.mxu0 %v2778_v1  ;;  %2435 = vmatprep.mubr.msk.f32.mxu1 %vm2779_vm0, %v2778_v1  ;;  %s382_s24 = scalar_lea.vmem %s3350_s1, %s2246_s15  ;;  %v474_v11 = vld [vmem:[%s3338_s4 + $0x8] sm:$0xff]  ;;  %v2252_v12 = vld [vmem:[%s3337_s3 + $0x20] sm:$0xff]  ;;  %v2269_v14 = vld [vmem:[%s3337_s3 + $0x58] sm:$0xff]  ;;  %s378_s23 = scalar_lea.vmem %s3352_s0, %s2246_s15 }
  0x1e   : > { %2419 = vmatpush3.msra.mxu0 %v390_v2  ;;  %v2921_v5 = vld [vmem:[%s382_s24] sm:$0xff]  ;;  %2428 = vmatpush3.msra.mxu1 %v476_v7  ;;  %v2268_v15 = vld [vmem:[%s3337_s3 + $0x50] sm:$0xff]  ;;  %v2262_v16 = vld [vmem:[%s3338_s4 + $0x38] sm:$0xff]  ;;  %s3166_s24 = scalar_lea.vmem [#allocation5], %s2244_s18  ;;  %s3344_s15 = smov 8  }
  0x1f   : > { %2420 = vmatprep.subr.mxu0 %v2778_v1  ;;  %2429 = vmatprep.subr.mxu1 %v2778_v1  ;;  %v473_v13 = vld [vmem:[%s3338_s4] sm:$0xff]  ;;  %v2267_v17 = vld [vmem:[%s3337_s3 + $0x48] sm:$0xff]  ;;  %v2261_v18 = vld [vmem:[%s3338_s4 + $0x30] sm:$0xff] }
  0x20   : > { %2421 = vmatpush3.msra.mxu0 %v389_v3  ;;  %2430 = vmatpush3.msra.mxu1 %v475_v9  ;;  %v2266_v19 = vld [vmem:[%s3337_s3 + $0x40] sm:$0xff]  ;;  %v2283_v20 = vld [vmem:[%s3337_s3 + $0x78] sm:$0xff]  ;;  %v2260_v21 = vld [vmem:[%s3338_s4 + $0x28] sm:$0xff] }
  0x21   : > { %2422 = vmatprep.subr.mxu0 %v2778_v1  ;;  %2431 = vmatprep.subr.mxu1 %v2778_v1  ;;  %v2282_v22 = vld [vmem:[%s3337_s3 + $0x70] sm:$0xff]  ;;  %v2259_v23 = vld [vmem:[%s3338_s4 + $0x20] sm:$0xff]  ;;  %v2281_v24 = vld [vmem:[%s3337_s3 + $0x68] sm:$0xff] }
  0x22   : > { %2423 = vmatpush3.msra.mxu0 %v388_v4  ;;  %2432 = vmatpush3.msra.mxu1 %v474_v11  ;;  %v2280_v25 = vld [vmem:[%s3337_s3 + $0x60] sm:$0xff]  ;;  %v1071_v26 = vld [vmem:[%s3351_s2 + $0x18] sm:$0xff]  ;;  %v1070_v28 = vld [vmem:[%s3351_s2 + $0x10] sm:$0xff] }
  0x23   : > { %2425 = vmatmul.mubr.msk.f32.vlgmr.msra.gmra.mxu0 %vm399_vm1, %v2921_v5  ;;  %2438 = vmatprep.subr.mxu0 %v2778_v1  ;;  %v2276_v27 = vld [vmem:[%s3338_s4 + $0x58] sm:$0xff]  ;;  %v2275_v29 = vld [vmem:[%s3338_s4 + $0x50] sm:$0xff]  ;;  %v1069_v30 = vld [vmem:[%s3351_s2 + $0x8] sm:$0xff] }
  0x24   : > { %2439 = vmatpush3.msra.mxu0 %v2255_v6  ;;  %2446 = vmatprep.mubr.msk.f32.mxu0 %vm2779_vm0, %v2778_v1  ;;  %v1068_v31 = vld [vmem:[%s3351_s2] sm:$0xff]  ;;  %v2274_v33 = vld [vmem:[%s3338_s4 + $0x48] sm:$0xff]  ;;  %v2290_v35 = vld [vmem:[%s3338_s4 + $0x78] sm:$0xff] }
  0x25   : > { %2440 = vmatprep.subr.mxu0 %v2778_v1  ;;  %2433 = vmatprep.subr.mxu1 %v2778_v1  ;;  %v3053_v32 = vld [vmem:[%s378_s23] sm:$0xff]  ;;  %v2289_v36 = vld [vmem:[%s3338_s4 + $0x70] sm:$0xff]  ;;  %v2288_v37 = vld [vmem:[%s3338_s4 + $0x68] sm:$0xff]  ;;  %s2105_s23 = sshll.u32 %s3166_s24, 4  ;;  %s3261_s23 = int_to_ptr.vmem [resolvable:$true] %s2105_s23 }
  0x26   : > { %2441 = vmatpush3.msra.mxu0 %v2254_v8  ;;  %2434 = vmatpush3.msra.mxu1 %v473_v13  ;;  %v2273_v34 = vld [vmem:[%s3338_s4 + $0x40] sm:$0xff]  ;;  %s2670_s27 = scalar_lea.vmem %s3261_s23, 512 }
  0x27   : > { %2442 = vmatprep.subr.mxu0 %v2778_v1  ;;  %2449 = vmatprep.subr.mxu1 %v2778_v1  ;;  %v2287_v38 = vld [vmem:[%s3338_s4 + $0x60] sm:$0xff]  ;;  %p2671_p12 = scmp.ne.s32.totalorder %s3261_s23, %s2670_s27 }
  0x28   : > { %2443 = vmatpush3.msra.mxu0 %v2253_v10  ;;  %2436 = vmatmul.mubr.msk.f32.vlgmr.msra.gmra.mxu1 %vm399_vm1, %v2921_v5  ;;  %v2248_v39 = vld [vmem:[%s3340_s6] ss:$0 sm:$0xff]  ;;  %v2257_v43 = vld [vmem:[%s3340_s6 + $0x1] ss:$0 sm:$0xff]  ;;  %v2271_v52 = vld [vmem:[%s3340_s6 + $0x2] ss:$0 sm:$0xff] }
  0x29   : > { %2444 = vmatprep.subr.mxu0 %v2778_v1  ;;  %2450 = vmatpush3.msra.mxu1 %v2262_v16  ;;  %v2250_v46 = vld [vmem:[%s3341_s7] ss:$0 sm:$0xff]  ;;  %v2264_v56 = vld [vmem:[%s3341_s7 + $0x1] ss:$0 sm:$0xff]  ;;  %v2285_v57 = vld [vmem:[%s3340_s6 + $0x3] ss:$0 sm:$0xff]  ;;  %p2672_p13 = pnand %p2671_p12, %p2876_p4 }
  0x2a   : > { %2445 = vmatpush3.msra.mxu0 %v2252_v12  ;;  %2451 = vmatprep.subr.mxu1 %v2778_v1  ;;  %v2294_v0 = vld [vmem:[%s3339_s5] ss:$0 sm:$0xff]  ;;  %v2278_v6 = vld [vmem:[%s3341_s7 + $0x2] ss:$0 sm:$0xff]  ;;  %v2292_v10 = vld [vmem:[%s3341_s7 + $0x3] ss:$0 sm:$0xff] }
  0x2b   : > { %2447 = vmatmul.mubr.msk.f32.vlgmr.msra.gmra.mxu0 %vm399_vm1, %v2921_v5  ;;  %2460 = vmatprep.subr.mxu0 %v2778_v1  ;;  %v2300_v16 = vld [vmem:[%s3351_s2 + $0x28] sm:$0xff]  ;;  %p2673_p0 = pneg %p2672_p13 }
  0x2c   : > { %2461 = vmatpush3.msra.mxu0 %v2269_v14  ;;  %2468 = vmatprep.mubr.msk.f32.mxu0 %vm2779_vm0, %v2778_v1  ;;  %v2302_v14 = vld [vmem:[%s3351_s2 + $0x38] sm:$0xff] }
  0x2d   : > { %2462 = vmatprep.subr.mxu0 %v2778_v1  ;;  %2452 = vmatpush3.msra.mxu1 %v2261_v18 }
  0x2e   : > { %2463 = vmatpush3.msra.mxu0 %v2268_v15  ;;  %2453 = vmatprep.subr.mxu1 %v2778_v1  ;;  %v2301_v15 = vld [vmem:[%s3351_s2 + $0x30] sm:$0xff] }
  0x2f   : > { %2464 = vmatprep.subr.mxu0 %v2778_v1  ;;  %2454 = vmatpush3.msra.mxu1 %v2260_v21 }
  0x30   : > { %2465 = vmatpush3.msra.mxu0 %v2267_v17  ;;  %2455 = vmatprep.subr.mxu1 %v2778_v1  ;;  %v2299_v17 = vld [vmem:[%s3351_s2 + $0x20] sm:$0xff] }
  0x31   : > { %2466 = vmatprep.subr.mxu0 %v2778_v1  ;;  %2456 = vmatpush3.msra.mxu1 %v2259_v23 }
  0x32   : > { %2467 = vmatpush3.msra.mxu0 %v2266_v19  ;;  %2457 = vmatprep.mubr.msk.f32.mxu1 %vm2779_vm0, %v2778_v1 }
  0x33   : > { %2469 = vmatmul.mubr.msk.f32.vlgmr.msra.gmra.mxu0 %vm399_vm1, %v2921_v5  ;;  %2482 = vmatprep.subr.mxu0 %v2778_v1 }
  0x34   : > { %2483 = vmatpush3.msra.mxu0 %v2283_v20  ;;  %2490 = vmatprep.mubr.msk.f32.mxu0 %vm2779_vm0, %v2778_v1 }
  0x35   : > { %2484 = vmatprep.subr.mxu0 %v2778_v1  ;;  %2471 = vmatprep.subr.mxu1 %v2778_v1 }
  0x36   : > { %2485 = vmatpush3.msra.mxu0 %v2282_v22  ;;  %2458 = vmatmul.mubr.msk.f32.vlgmr.msra.gmra.mxu1 %vm399_vm1, %v2921_v5 }
  0x37   : > { %2486 = vmatprep.subr.mxu0 %v2778_v1  ;;  %2472 = vmatpush3.msra.mxu1 %v2276_v27 }
  0x38   : > { %2487 = vmatpush3.msra.mxu0 %v2281_v24  ;;  %2473 = vmatprep.subr.mxu1 %v2778_v1 }
  0x39   : > { %2488 = vmatprep.subr.mxu0 %v2778_v1  ;;  %2474 = vmatpush3.msra.mxu1 %v2275_v29 }
  0x3a   : > { %2489 = vmatpush3.msra.mxu0 %v2280_v25  ;;  %2475 = vmatprep.subr.mxu1 %v2778_v1 }
  0x3b   : > { %2491 = vmatmul.mubr.msk.f32.vlgmr.msra.gmra.mxu0 %vm399_vm1, %v2921_v5  ;;  %2504 = vmatprep.subr.mxu0 %v2778_v1 }
  0x3c   : > { %2505 = vmatpush3.msra.mxu0 %v1071_v26  ;;  %2512 = vmatprep.mubr.msk.f32.mxu0 %vm2779_vm0, %v2778_v1 }
  0x3d   : > { %2506 = vmatprep.subr.mxu0 %v2778_v1  ;;  %2479 = vmatprep.mubr.msk.f32.mxu1 %vm2779_vm0, %v2778_v1 }
  0x3e   : > { %2507 = vmatpush3.msra.mxu0 %v1070_v28  ;;  %2476 = vmatpush3.msra.mxu1 %v2274_v33 }
  0x3f   : > { %2508 = vmatprep.subr.mxu0 %v2778_v1  ;;  %2477 = vmatprep.subr.mxu1 %v2778_v1 }
  0x40   : > { %2509 = vmatpush3.msra.mxu0 %v1069_v30  ;;  %2478 = vmatpush3.msra.mxu1 %v2273_v34  ;;  %v2304_v30 = vld [vmem:[%s3339_s5 + $0x1] ss:$0 sm:$0xff] }
  0x41   : > { %2510 = vmatprep.subr.mxu0 %v2778_v1  ;;  %2493 = vmatprep.subr.mxu1 %v2778_v1 }
  0x42   : > { %2511 = vmatpush3.msra.mxu0 %v1068_v31  ;;  %2480 = vmatmul.mubr.msk.f32.vlgmr.msra.gmra.mxu1 %vm399_vm1, %v2921_v5 }
  0x43   : > { %2513 = vmatmul.mubr.msk.f32.vlgmr.msra.gmra.mxu0 %vm399_vm1, %v3053_v32  ;;  %2525 = vmatprep.subr.mxu0 %v2778_v1 }
  0x44   : > { %2533 = vmatprep.mubr.msk.f32.mxu0 %vm2779_vm0, %v2778_v1  ;;  %2494 = vmatpush3.msra.mxu1 %v2290_v35 }
  0x45   : > { %2501 = vmatprep.mubr.msk.f32.mxu1 %vm2779_vm0, %v2778_v1  ;;  %2495 = vmatprep.subr.mxu1 %v2778_v1 }
  0x46   : > { %2496 = vmatpush3.msra.mxu1 %v2289_v36  ;;  %2526 = vmatpush3.msra.mxu0 %v2302_v14  ;;  %v2313_v36 = vld [vmem:[%s3351_s2 + $0x58] sm:$0xff] }
  0x47   : > { %2497 = vmatprep.subr.mxu1 %v2778_v1  ;;  %2527 = vmatprep.subr.mxu0 %v2778_v1 }
  0x48   : > { %2498 = vmatpush3.msra.mxu1 %v2288_v37  ;;  %2528 = vmatpush3.msra.mxu0 %v2301_v15  ;;  %v2312_v37 = vld [vmem:[%s3351_s2 + $0x50] sm:$0xff] }
  0x49   : > { %2499 = vmatprep.subr.mxu1 %v2778_v1  ;;  %2529 = vmatprep.subr.mxu0 %v2778_v1 }
  0x4a   : > { %2500 = vmatpush3.msra.mxu1 %v2287_v38  ;;  %2530 = vmatpush3.msra.mxu0 %v2300_v16  ;;  %v2311_v38 = vld [vmem:[%s3351_s2 + $0x48] sm:$0xff] }
  0x4b   : > { %2515 = vmatprep.subr.mxu1 %v2778_v1  ;;  %2502 = vmatmul.mubr.msk.f32.vlgmr.msra.gmra.mxu1 %vm399_vm1, %v2921_v5 }
  0x4c   : > { %2517 = vmatprep.mubr.msk.f32.mxu1 %vm2779_vm0, %v2778_v1  ;;  %2531 = vmatprep.subr.mxu0 %v2778_v1 }
  0x4d   : > { %2532 = vmatpush3.msra.mxu0 %v2299_v17 }
  0x4e   : > { %2534 = vmatmul.mubr.msk.f32.vlgmr.msra.gmra.mxu0 %vm399_vm1, %v3053_v32  ;;  %2546 = vmatprep.subr.mxu0 %v2778_v1 }
  0x4f   : > { %2554 = vmatprep.mubr.msk.f32.mxu0 %vm2779_vm0, %v2778_v1  ;;  %2547 = vmatpush3.msra.mxu0 %v2313_v36 }
  0x50   : > { %2548 = vmatprep.subr.mxu0 %v2778_v1 }
  0x51   : > { %2549 = vmatpush3.msra.mxu0 %v2312_v37 }
  0x52   : > { %2550 = vmatprep.subr.mxu0 %v2778_v1 }
  0x53   : > { %2551 = vmatpush3.msra.mxu0 %v2311_v38 }
  0x54   : > { %2552 = vmatprep.subr.mxu0 %v2778_v1 }
  0xe3   : > { %v469_v40 = vpop.f32.mrf.mxu0 }
  0xe4   : > { %v470_v41 = vadd.f32 %v2248_v39, %v469_v40  ;;  %v2310_v39 = vld [vmem:[%s3351_s2 + $0x40] sm:$0xff] }
  0xe5   : > { %v2426_v42 = vpop.f32.mrf.mxu0  ;;  %2553 = vmatpush3.msra.mxu0 %v2310_v39 }
  0xe6   : > { %555 = vst.msk [vmem:[#allocation2] sm:$0xff] %vm554_vm2, %v470_v41  ;;  %2555 = vmatmul.mubr.msk.f32.vlgmr.msra.gmra.mxu0 %vm399_vm1, %v3053_v32  ;;  %2567 = vmatprep.subr.mxu0 %v2778_v1 }
  0xe7   : > { %2575 = vmatprep.mubr.msk.f32.mxu0 %vm2779_vm0, %v2778_v1 }
  0xe8   : > { %v550_v49 = vpop.f32.mrf.mxu1 }
  0xe9   : > { %v551_v50 = vadd.f32 %v2250_v46, %v550_v49 }
  0xea   : > { %v2437_v51 = vpop.f32.mrf.mxu1 }
  0xeb   : > { %v636_v44 = vpop.f32.mrf.mxu0  ;;  %556 = vst.msk [vmem:[#allocation3] sm:$0xff] %vm554_vm2, %v551_v50 }
  0xec   : > { %v637_v45 = vadd.f32 %v2257_v43, %v636_v44 }
  0xed   : > { %v2448_v47 = vpop.f32.mrf.mxu0  ;;  %v1153_v48 = vld [vmem:[#allocation2] sm:$0xff] }
  0xee   : > { %724 = vst.msk [vmem:[#allocation2 + $0x8] sm:$0xff] %vm554_vm2, %v637_v45  ;;  %2516 = vmatpush3.xpose.msk.msra.mxu1 %vm554_vm2, %v1153_v48 }
  0xef   : > { %2520 = vmatprep.subr.mxu1 %v2778_v1 }
  0xf2   : > { %v1243_v4 = vld [vmem:[#allocation3] sm:$0xff] }
  0xf3   : > { %v806_v53 = vpop.f32.mrf.mxu0 }
  0xf4   : > { %v807_v54 = vadd.f32 %v2271_v52, %v806_v53 }
  0xf5   : > { %v2470_v55 = vpop.f32.mrf.mxu0  ;;  %v1402_v34 = vld [vmem:[#allocation2 + $0x8] sm:$0xff] }
  0xf6   : > { %894 = vst.msk [vmem:[#allocation2 + $0x10] sm:$0xff] %vm554_vm2, %v807_v54  ;;  %v719_v58 = vpop.f32.mrf.mxu1  ;;  %v2315_v54 = vld [vmem:[%s3339_s5 + $0x2] ss:$0 sm:$0xff] }
  0xf7   : > { %v720_v60 = vadd.f32 %v2264_v56, %v719_v58 }
  0xf8   : > { %v2459_v62 = vpop.f32.mrf.mxu1 }
  0xf9   : > { %726 = vst.msk [vmem:[#allocation3 + $0x8] sm:$0xff] %vm554_vm2, %v720_v60  ;;  %v2323_v60 = vld [vmem:[%s3351_s2 + $0x70] sm:$0xff]  ;;  %v2321_v62 = vld [vmem:[%s3351_s2 + $0x60] sm:$0xff] }
  0xfb   : > { %v976_v59 = vpop.f32.mrf.mxu0 }
  0xfc   : > { %v977_v61 = vadd.f32 %v2285_v57, %v976_v59  ;;  %v2324_v59 = vld [vmem:[%s3351_s2 + $0x78] sm:$0xff] }
  0xfd   : > { %v2492_v63 = vpop.f32.mrf.mxu0  ;;  %v1657_v57 = vld [vmem:[#allocation2 + $0x10] sm:$0xff]  ;;  %2568 = vmatpush3.msra.mxu0 %v2324_v59 }
  0xfe   : > { %1064 = vst.msk [vmem:[#allocation2 + $0x18] sm:$0xff] %vm554_vm2, %v977_v61  ;;  %2569 = vmatprep.subr.mxu0 %v2778_v1  ;;  %v2322_v61 = vld [vmem:[%s3351_s2 + $0x68] sm:$0xff] }
  0xff   : > { %2570 = vmatpush3.msra.mxu0 %v2323_v60 }
 0x100   : > { %v1493_v35 = vld [vmem:[#allocation3 + $0x8] sm:$0xff]  ;;  %2571 = vmatprep.subr.mxu0 %v2778_v1 }
 0x101   : > { %2572 = vmatpush3.msra.mxu0 %v2322_v61 }
 0x102   : > { %v889_v7 = vpop.f32.mrf.mxu1  ;;  %2573 = vmatprep.subr.mxu0 %v2778_v1 }
 0x103   : > { %v1149_v2 = vpop.f32.mrf.mxu0  ;;  %v890_v8 = vadd.f32 %v2278_v6, %v889_v7  ;;  %2574 = vmatpush3.msra.mxu0 %v2321_v62 }
 0x104   : > { %v1150_v3 = vadd.f32 %v2294_v0, %v1149_v2  ;;  %v2481_v9 = vpop.f32.mrf.mxu1  ;;  %2576 = vmatmul.mubr.msk.f32.vlgmr.msra.gmra.mxu0 %vm399_vm1, %v3053_v32 }
 0x105   : > { %v2514_v5 = vpop.f32.mrf.mxu0  ;;  %896 = vst.msk [vmem:[#allocation3 + $0x10] sm:$0xff] %vm554_vm2, %v890_v8  ;;  %v1912_v16 = vld [vmem:[#allocation2 + $0x18] sm:$0xff] }
 0x106   : > { %2518 = vmatmul.mubr.msk.f32.vlgmr.msra.gmra.mxu1 %vm554_vm2, %v1150_v3 }
 0x107   : > { %2521 = vmatpush3.msra.mxu1 %v1243_v4  ;;  %2522 = vmatprep.mubr.msk.f32.mxu1 %vm2779_vm0, %v2778_v1 }
 0x108   : > { %2536 = vmatprep.subr.mxu1 %v2778_v1 }
 0x10b   : > { %v1059_v11 = vpop.f32.mrf.mxu1 }
 0x10c   : > { %v1060_v12 = vadd.f32 %v2292_v10, %v1059_v11  ;;  %v1748_v58 = vld [vmem:[#allocation3 + $0x10] sm:$0xff] }
 0x10d   : > { %v2503_v13 = vpop.f32.mrf.mxu1 }
 0x10e   : > { %1066 = vst.msk [vmem:[#allocation3 + $0x18] sm:$0xff] %vm554_vm2, %v1060_v12  ;;  %v1397_v26 = vpop.f32.mrf.mxu0  ;;  %v2326_v13 = vld [vmem:[%s3339_s5 + $0x3] ss:$0 sm:$0xff] }
 0x10f   : > { %v1398_v33 = vadd.f32 %v2304_v30, %v1397_v26 }
 0x110   : > { %v2535_v27 = vpop.f32.mrf.mxu0 }
 0x115   : > { %v2003_v17 = vld [vmem:[#allocation3 + $0x18] sm:$0xff] }
 0x1a6   : > { %v1652_v50 = vpop.f32.mrf.mxu0 }
 0x1a7   : > { %v1653_v56 = vadd.f32 %v2315_v54, %v1652_v50 }
 0x1a8   : > { %v2556_v51 = vpop.f32.mrf.mxu0 }
 0x1c4   : > { %v1907_v10 = vpop.f32.mrf.mxu0 }
 0x1c5   : > { %v1908_v15 = vadd.f32 %v2326_v13, %v1907_v10 }
 0x1c6   : > { %v1227_v18 = vpop.f32.mrf.mxu1  ;;  %v2577_v11 = vpop.f32.mrf.mxu0 }
 0x1c7   : > { %v1231_v19 = vsel %vm554_vm2, %v1227_v18, -inf }
 0x1c8   : > { %1232 = vmax.xlane.f32.xlu0 %v1231_v19  ;;  %v2519_v20 = vpop.f32.mrf.mxu1 }
 0x251   : > { %v1233_v21 = vpop.xlane.xlu0 %1232 }
 0x252   : > { %v1234_v22 = vsub.f32 %v1227_v18, %v1233_v21 }
 0x254   : > { %v1235_v23 = vmul.f32 1.442695, %v1234_v22 }
 0x256   : > { %2654 = vpow2.f32 %v1235_v23 }
 0x263   : > { %v2655_v24 = vpop.eup %2654 }
 0x264   : > { %v1237_v25 = vsel %vm554_vm2, %v2655_v24, 0.0 }
 0x265   : > { %1238 = vadd.xlane.f32.xlu0 %v1237_v25 }
 0x2ee   : > { %v1239_v28 = vpop.xlane.xlu0 %1238 }
 0x2ef   : > { %2656 = vrcp.f32 %v1239_v28 }
 0x2fc   : > { %v2657_v29 = vpop.eup %2656 }
 0x2fd   : > { %v1241_v31 = vmul.f32 %v2657_v29, %v2655_v24 }
 0x2ff   : > { %1242 = vst.msk [vmem:[%s3166_s24] sm:$0xff] %vm554_vm2, %v1241_v31  ;;  %2523 = vmatmul.mubr.msk.f32.vlgmr.msra.gmra.mxu1 %vm554_vm2, %v1241_v31 }
 0x300   : > { %2537 = vmatpush3.xpose.msk.msra.mxu1 %vm554_vm2, %v1402_v34  ;;  %2538 = vmatprep.mubr.msk.f32.mxu1 %vm2779_vm0, %v2778_v1 }
 0x301   : > { %2541 = vmatprep.subr.mxu1 %v2778_v1 }
 0x303   : > { %2539 = vmatmul.mubr.msk.f32.vlgmr.msra.gmra.mxu1 %vm554_vm2, %v1398_v33 }
 0x304   : > { %2542 = vmatpush3.msra.mxu1 %v1493_v35  ;;  %2543 = vmatprep.mubr.msk.f32.mxu1 %vm2779_vm0, %v2778_v1 }
 0x305   : > { %2557 = vmatprep.subr.mxu1 %v2778_v1 }
 0x3bf   : > { %v1313_v40 = vpop.f32.mrf.mxu1 }
 0x3c0   : > { %1317 = vst.msk [vmem:[#allocation4] sm:$0xff] %vm554_vm2, %v1313_v40 }
 0x3c1   : > { %v2524_v41 = vpop.f32.mrf.mxu1 }
 0x3c3   : > { %v1475_v42 = vpop.f32.mrf.mxu1 }
 0x3c4   : > { %v1479_v43 = vsel %vm554_vm2, %v1475_v42, -inf }
 0x3c5   : > { %1480 = vmax.xlane.f32.xlu1 %v1479_v43  ;;  %v2540_v44 = vpop.f32.mrf.mxu1 }
 0x44e   : > { %v1481_v45 = vpop.xlane.xlu1 %1480 }
 0x44f   : > { %v1482_v46 = vsub.f32 %v1475_v42, %v1481_v45 }
 0x451   : > { %v1483_v47 = vmul.f32 1.442695, %v1482_v46 }
 0x453   : > { %2658 = vpow2.f32 %v1483_v47 }
 0x460   : > { %v2659_v48 = vpop.eup %2658 }
 0x461   : > { %v1485_v49 = vsel %vm554_vm2, %v2659_v48, 0.0 }
 0x462   : > { %1486 = vadd.xlane.f32.xlu1 %v1485_v49 }
 0x4eb   : > { %v1487_v52 = vpop.xlane.xlu1 %1486 }
 0x4ec   : > { %2660 = vrcp.f32 %v1487_v52 }
 0x4f9   : > { %v2661_v53 = vpop.eup %2660 }
 0x4fa   : > { %v1489_v55 = vmul.f32 %v2661_v53, %v2659_v48 }
 0x4fc   : > { %2308 = vst.msk [vmem:[%s3166_s24 + $0x8] sm:$0xff] %vm554_vm2, %v1489_v55  ;;  %2544 = vmatmul.mubr.msk.f32.vlgmr.msra.gmra.mxu1 %vm554_vm2, %v1489_v55 }
 0x4fd   : > { %2558 = vmatpush3.xpose.msk.msra.mxu1 %vm554_vm2, %v1657_v57  ;;  %2559 = vmatprep.mubr.msk.f32.mxu1 %vm2779_vm0, %v2778_v1 }
 0x4fe   : > { %2562 = vmatprep.subr.mxu1 %v2778_v1 }
 0x500   : > { %2560 = vmatmul.mubr.msk.f32.vlgmr.msra.gmra.mxu1 %vm554_vm2, %v1653_v56 }
 0x501   : > { %2563 = vmatpush3.msra.mxu1 %v1748_v58  ;;  %2564 = vmatprep.mubr.msk.f32.mxu1 %vm2779_vm0, %v2778_v1 }
 0x502   : > { %2578 = vmatprep.subr.mxu1 %v2778_v1 }
 0x5bc   : > { %v1563_v63 = vpop.f32.mrf.mxu1 }
 0x5be   : > { %v2545_v0 = vpop.f32.mrf.mxu1 }
 0x5c0   : > { %v1730_v2 = vpop.f32.mrf.mxu1 }
 0x5c1   : > { %v1734_v3 = vsel %vm554_vm2, %v1730_v2, -inf }
 0x5c2   : > { %1735 = vmax.xlane.f32.xlu0 %v1734_v3  ;;  %v2561_v4 = vpop.f32.mrf.mxu1 }
 0x64b   : > { %v1736_v5 = vpop.xlane.xlu0 %1735 }
 0x64c   : > { %v1737_v6 = vsub.f32 %v1730_v2, %v1736_v5 }
 0x64e   : > { %v1738_v7 = vmul.f32 1.442695, %v1737_v6 }
 0x650   : > { %2662 = vpow2.f32 %v1738_v7 }
 0x65d   : > { %v2663_v8 = vpop.eup %2662 }
 0x65e   : > { %v1740_v9 = vsel %vm554_vm2, %v2663_v8, 0.0 }
 0x65f   : > { %1741 = vadd.xlane.f32.xlu1 %v1740_v9 }
 0x6e8   : > { %v1742_v12 = vpop.xlane.xlu1 %1741 }
 0x6e9   : > { %2664 = vrcp.f32 %v1742_v12 }
 0x6f6   : > { %v2665_v32 = vpop.eup %2664 }
 0x6f7   : > { %v1744_v14 = vmul.f32 %v2665_v32, %v2663_v8 }
 0x6f9   : > { %2319 = vst.msk [vmem:[%s3166_s24 + $0x10] sm:$0xff] %vm554_vm2, %v1744_v14  ;;  %2565 = vmatmul.mubr.msk.f32.vlgmr.msra.gmra.mxu1 %vm554_vm2, %v1744_v14 }
 0x6fa   : > { %2579 = vmatpush3.xpose.msk.msra.mxu1 %vm554_vm2, %v1912_v16  ;;  %2580 = vmatprep.mubr.msk.f32.mxu1 %vm2779_vm0, %v2778_v1 }
 0x6fb   : > { %2583 = vmatprep.subr.mxu1 %v2778_v1 }
 0x6fd   : > { %2581 = vmatmul.mubr.msk.f32.vlgmr.msra.gmra.mxu1 %vm554_vm2, %v1908_v15 }
 0x6fe   : > { %2584 = vmatpush3.msra.mxu1 %v2003_v17  ;;  %2585 = vmatprep.mubr.msk.f32.mxu1 %vm2779_vm0, %v2778_v1 }
 0x7b9   : > { %v1818_v18 = vpop.f32.mrf.mxu1 }
 0x7bb   : > { %v2566_v19 = vpop.f32.mrf.mxu1 }
 0x7bd   : > { %v1985_v20 = vpop.f32.mrf.mxu1 }
 0x7be   : > { %v1989_v21 = vsel %vm554_vm2, %v1985_v20, -inf }
 0x7bf   : > { %1990 = vmax.xlane.f32.xlu0 %v1989_v21  ;;  %v2582_v22 = vpop.f32.mrf.mxu1 }
 0x7d5   : > { %1568 = vrot.lane.b32.xlu0 %v1563_v63, %s3344_s15 }
 0x848   : > { %v1991_v23 = vpop.xlane.xlu0 %1990 }
 0x849   : > { %v1992_v24 = vsub.f32 %v1985_v20, %v1991_v23 }
 0x84b   : > { %v1993_v25 = vmul.f32 1.442695, %v1992_v24 }
 0x84c   : > { %v1569_v26 = vpop.permute.xlu0 %1568 }
 0x84d   : > { %2666 = vpow2.f32 %v1993_v25  ;;  %1572 = vst.msk [vmem:[#allocation4] sm:$0xff] %vm1571_vm3, %v1569_v26 }
 0x85a   : > { %v2667_v1 = vpop.eup %2666 }
 0x85b   : > { %v1995_v27 = vsel %vm554_vm2, %v2667_v1, 0.0 }
 0x85c   : > { %1996 = vadd.xlane.f32.xlu1 %v1995_v27 }
 0x86d   : > { %1823 = vrot.lane.b32.xlu1 %v1818_v18, %s2781_s26  ;;  %s2782_s26 = smov [#allocation5]  }
 0x86e   : > { %s2674_s15 = sshll.u32 %s2782_s26, 4  ;;  %s2675_s15 = int_to_ptr.vmem [resolvable:$false] %s2674_s15 }
 0x86f   : > { %s2676_s0 = scalar_lea.vmem %s2675_s15, 1024  ;;  %p2677_p1 = scmp.lt.s32.totalorder %s3261_s23, %s2675_s15 }
 0x870   : > { %p2678_p2 = scmp.lt.s32.totalorder %s2676_s0, %s2670_s27 }
 0x872   : > { %p2679_p3 = por %p2678_p2, %p2677_p1 }
 0x874   : > { %p2680_p5 = pnand %p2679_p3, %p2673_p0 }
 0x8e5   : > { %v1997_v28 = vpop.xlane.xlu1 %1996 }
 0x8e6   : > { %2668 = vrcp.f32 %v1997_v28 }
 0x8e9   : > { %v1824_v29 = vpop.permute.xlu1 %1823 }
 0x8ea   : > { %1827 = vst.msk [vmem:[#allocation4] sm:$0xff] %vm1826_vm4, %v1824_v29 }
 0x8f3   : > { %v2669_v30 = vpop.eup %2668 }
 0x8f4   : > { %v1999_v31 = vmul.f32 %v2669_v30, %v2667_v1 }
 0x8f6   : > { %2330 = vst.msk [vmem:[%s3166_s24 + $0x18] sm:$0xff] %vm554_vm2, %v1999_v31  ;;  %2586 = vmatmul.mubr.msk.f32.vlgmr.msra.gmra.mxu1 %vm554_vm2, %v1999_v31 }
 0x8f7   : > { %2683 = shalt.err (!%p2680_p5)
}
 0x8f8   : > { %s2684_s24 = scalar_lea.hbm %s3258_s20, 512  ;;  %s2688_s18 = scalar_lea.hbm %s3342_s8, 1024 }
 0x8f9   : > { %p2685_p6 = scmp.ne.s32.totalorder %s3258_s20, %s2684_s24  ;;  %p2689_p10 = scmp.lt.s32.totalorder %s3258_s20, %s3342_s8 }
 0x8fa   : > { %p2690_p11 = scmp.lt.s32.totalorder %s2688_s18, %s2684_s24 }
 0x8fb   : > { %p2686_p7 = pnand %p2685_p6, %p2876_p4 }
 0x8fc   : > { %p2691_p12 = por %p2690_p11, %p2689_p10 }
 0x8fd   : > { %p2687_p9 = pneg %p2686_p7 }
 0x8ff   : > { %p2692_p13 = pnand %p2691_p12, %p2687_p9 }
 0x901   : > { %2695 = shalt.err (!%p2692_p13)
}
 0x902   : > { %s2783_s0 = smov 128   ;;  %s3353_s15 = smov 8   ;;  %vm2081_vm5 = vcmask 261312  }
 0x903   : > { %s3354_s27 = scalar_lea.sflag [#allocation6], %s3160_s16  ;;  %s2784_s28 = smov 24  }
 0x904   : > { %2588 = dma.vmem_to_hbm [thread:$0]  (%p2876_p4), %s3261_s23, 512, %s3258_s20, %s3354_s27, %s2783_s0, %s2783_s0, %s3353_s15  }
 0x905   : > { %s2245_s25 = sshll.u32 %s3160_s16, 3  ;;  %s2336_s24 = sshll.u32 %s2768_s12, 7 }
 0x906   : > { %s371_s29 = scalar_lea.vmem [#allocation7], %s2245_s25  ;;  %s3292_s2 = scalar_lea.hbm %s3343_s9, %s2336_s24 }
 0x907   : > { %s2122_s18 = sshll.u32 %s371_s29, 4  ;;  %s2091_s20 = scalar_lea.sflag [#allocation8], %s3160_s16  ;;  %s2123_s18 = int_to_ptr.vmem [resolvable:$true] %s2122_s18 }
 0x908   : > { %s2696_s23 = scalar_lea.vmem %s2123_s18, 128  ;;  %s2785_s0 = smov [#allocation7]  }
 0x909   : > { %p2697_p0 = scmp.ne.s32.totalorder %s2123_s18, %s2696_s23  ;;  %s2700_s15 = sshll.u32 %s2785_s0, 4  ;;  %s2701_s15 = int_to_ptr.vmem [resolvable:$false] %s2700_s15 }
 0x90a   : > { %s2702_s12 = scalar_lea.vmem %s2701_s15, 256  ;;  %p2703_p3 = scmp.lt.s32.totalorder %s2123_s18, %s2701_s15 }
 0x90b   : > { %p2698_p1 = pnand %p2697_p0, %p2876_p4  ;;  %p2704_p5 = scmp.lt.s32.totalorder %s2702_s12, %s2696_s23 }
 0x90d   : > { %p2699_p2 = pneg %p2698_p1  ;;  %p2705_p6 = por %p2704_p5, %p2703_p3 }
 0x90f   : > { %p2706_p7 = pnand %p2705_p6, %p2699_p2 }
 0x9b6   : > { %v2073_v33 = vpop.f32.mrf.mxu1 }
 0x9b7   : > { %2078 = vrot.lane.b32.xlu1 %v2073_v33, %s2784_s28 }
 0x9b8   : > { %v2587_v34 = vpop.f32.mrf.mxu1 }
 0xa29   : > { %v2079_v35 = vpop.permute.xlu1 %2078 }
 0xa2a   : > { %2082 = vst.msk [vmem:[#allocation4] sm:$0xff] %vm2081_vm5, %v2079_v35 }
 0xa31   : > { %v2083_v36 = vld [vmem:[#allocation4] sm:$0xff] }
 0xa32   : > { %2084 = vst.msk [vmem:[%s371_s29] sm:$0xff] %vm399_vm1, %v2083_v36 }
 0xa33   : > { %2709 = shalt.err (!%p2706_p7)
}
 0xa34   : > { %s2710_s1 = scalar_lea.hbm %s3292_s2, 128  ;;  %s2714_s28 = scalar_lea.hbm %s3343_s9, 256 }
 0xa35   : > { %p2711_p9 = scmp.ne.s32.totalorder %s3292_s2, %s2710_s1  ;;  %p2715_p12 = scmp.lt.s32.totalorder %s3292_s2, %s3343_s9 }
 0xa36   : > { %p2716_p13 = scmp.lt.s32.totalorder %s2714_s28, %s2710_s1 }
 0xa37   : > { %p2712_p10 = pnand %p2711_p9, %p2876_p4 }
 0xa38   : > { %p2717_p0 = por %p2716_p13, %p2715_p12 }
 0xa39   : > { %p2713_p11 = pneg %p2712_p10 }
 0xa3b   : > { %p2718_p1 = pnand %p2717_p0, %p2713_p11 }
 0xa3d   : > { %2721 = shalt.err (!%p2718_p1)
}
 0xa3e   : > { %2589 = dma.vmem_to_hbm [thread:$0]  (%p2876_p4), %s2123_s18, 128, %s3292_s2, %s2091_s20  }
 0xa3f PF: > { %p2599_p2 = scmp.ge.s32.totalorder %s2776_s14, 2  ;;  %s2134_s29 = sand.u32 1, %s2756_s30  }
 0xa40   : > { %s2135_s26 = scalar_lea.sflag [#allocation6], %s2134_s29 }
 0xa41   : > { %p2593_p3 = pnand %p2599_p2, %p2883_p8 }
 0xa43   : > { %p2594_p5 = pneg %p2593_p3 }
 0xa45   : > { %2747 = dma.done.wait (%p2594_p5), %s2135_s26, 512  }
 0xa46   : > { %2749 = vsyncadd (%p2594_p5), %s2135_s26, 4294966784  ;;  %s2144_s23 = scalar_lea.sflag [#allocation8], %s2134_s29 }
 0xa47   : > { %2751 = dma.done.wait (%p2594_p5), %s2144_s23, 128  }
 0xa48   : > { %2753 = vsyncadd (%p2594_p5), %s2144_s23, 4294967168  ;;  %s26_s14 = sadd.s32 1, %s2776_s14   ;;  %s3355_s30 = smov %s2760_s10 }
 0xa49   : > { %p23_p6 = scmp.ge.s32.totalorder %s26_s14, 4   ;;  %s3356_s10 = smov %s2764_s11 }
 0xa4a   : > { %s3357_s11 = smov %s2889_s22  ;;  %s3358_s12 = smov %s2772_s13 }
 0xa4b   : > { %s3359_s13 = smov %s3361_s17  ;;  %25 = sbr.rel (!%p23_p6) target bundleno = 10 (0xa), region = 144 }
 0xa50   :  { %2149 = vsyncpa [#allocation6], 1 }
 0xa51   :  { %2151 = vsyncpa [#allocation6 + $0x1], 1 }
 0xa52   :  { %2152 = vsyncpa [#allocation8], 1 }
 0xa53   :  { %2154 = vsyncpa [#allocation8 + $0x1], 1 }

</bundles_post_ra>
